<compile_context>
chip_gen: v7x
topology: tpu7x:2x2x1
jax: 0.10.0
libtpu: 0.0.40
codegen_flags: <defaults>
</compile_context>

<pallas_src>
import jax
import jax.numpy as jnp
from jax.experimental import pallas as pl

# ---- model hyper-parameters (small, consistent with the module) ------------
NUM_LAYERS = 2   # TransformerEncoder num_layers
B = 2            # batch
S = 8            # sequence length
D = 32           # embed_dim
H = 4            # num_heads
DH = D // H      # head dim
F = 64           # ff_dim
LN_EPS = 1e-5


def _layernorm(x, gamma, beta):
    # x: (B*S, D) f32, gamma/beta: (1, D)
    mean = jnp.mean(x, axis=-1, keepdims=True)
    var = jnp.mean((x - mean) ** 2, axis=-1, keepdims=True)
    inv = jax.lax.rsqrt(var + LN_EPS)
    return (x - mean) * inv * gamma + beta


def encoder_layer_kernel(x_ref, wqkv_ref, bqkv_ref, wo_ref, w1_ref, b1_ref,
                         w2_ref, vec_ref, o_ref):
    # x_ref:    (B*S, D)   activations (batch*seq flattened)
    # wqkv_ref: (D, 3D)    fused Q|K|V projection weight
    # bqkv_ref: (1, 3D)    fused Q|K|V projection bias
    # wo_ref:   (D, D)     attention output projection weight
    # w1_ref:   (D, F), b1_ref: (1, F), w2_ref: (F, D)   FFN
    # vec_ref:  (6, D)     rows = [bo, gamma1, beta1, b2, gamma2, beta2]
    x = x_ref[...]

    # ---- fused QKV projection on the whole (B*S, D) slab ----
    qkv = jnp.dot(x, wqkv_ref[...], preferred_element_type=jnp.float32) + bqkv_ref[...]

    wo = wo_ref[...]
    scale = 1.0 / (DH ** 0.5)

    # ---- multi-head self-attention (q = k = v = x, mask = None) ----
    # Static loop over (batch, head); each head's context is folded straight
    # into the output projection (no per-head concat).
    attn_blocks = []
    for b in range(B):
        r0 = b * S
        acc = jnp.zeros((S, D), jnp.float32)
        for h in range(H):
            c = h * DH
            qh = qkv[r0:r0 + S, c:c + DH]                    # (S, DH)
            kh = qkv[r0:r0 + S, D + c:D + c + DH]            # (S, DH)
            vh = qkv[r0:r0 + S, 2 * D + c:2 * D + c + DH]    # (S, DH)
            s = jnp.dot(qh, kh.T, preferred_element_type=jnp.float32) * scale
            s = s - jnp.max(s, axis=-1, keepdims=True)
            p = jnp.exp(s)
            p = p * pl.reciprocal(jnp.sum(p, axis=-1, keepdims=True), approx=True)
            ctx = jnp.dot(p, vh, preferred_element_type=jnp.float32)         # (S, DH)
            acc = acc + jnp.dot(ctx, wo[c:c + DH, :],
                                preferred_element_type=jnp.float32)          # (S, D)
        attn_blocks.append(acc)
    attn = jnp.concatenate(attn_blocks, axis=0) + vec_ref[0:1, :]            # + bo

    # ---- residual + LayerNorm1 (dropout = identity, eval mode) ----
    y = _layernorm(x + attn, vec_ref[1:2, :], vec_ref[2:3, :])

    # ---- feed-forward on the whole (B*S, D) slab ----
    hdn = jnp.dot(y, w1_ref[...], preferred_element_type=jnp.float32) + b1_ref[...]
    hdn = jnp.maximum(hdn, 0.0)
    ff = jnp.dot(hdn, w2_ref[...], preferred_element_type=jnp.float32) + vec_ref[3:4, :]

    # ---- residual + LayerNorm2 ----
    z = _layernorm(y + ff, vec_ref[4:5, :], vec_ref[5:6, :])
    o_ref[...] = z.astype(o_ref.dtype)


# single-invocation pallas_call (no grid): whole arrays resident in VMEM
_layer_call = pl.pallas_call(
    encoder_layer_kernel,
    out_shape=jax.ShapeDtypeStruct((B * S, D), jnp.float32),
)


def _pack_layer(p):
    (wq, bq, wk, bk, wv, bv, wo, bo, g1, be1, w1, b1, w2, b2, g2, be2) = p
    wqkv = jnp.concatenate([wq, wk, wv], axis=1)                  # (D, 3D)
    bqkv = jnp.concatenate([bq, bk, bv], axis=1)                  # (1, 3D)
    vec = jnp.concatenate([bo, g1, be1, b2, g2, be2], axis=0)     # (6, D)
    return wqkv, bqkv, wo, w1, b1, w2, vec


@jax.jit
def transformer_encoder(x, layer_params):
    h = x.reshape(B * S, D)
    for p in layer_params:
        h = _layer_call(h, *_pack_layer(p))
    return h.reshape(B, S, D)


# ---------------- pure-JAX reference for verification -----------------------
def reference(x, layer_params):
    def ln(t, g, b):
        m = jnp.mean(t, -1, keepdims=True)
        v = jnp.mean((t - m) ** 2, -1, keepdims=True)
        return (t - m) / jnp.sqrt(v + LN_EPS) * g + b

    h = x
    for (wq, bq, wk, bk, wv, bv, wo, bo,
         g1, be1, w1, b1, w2, b2, g2, be2) in layer_params:
        q = h @ wq + bq
        k = h @ wk + bk
        v = h @ wv + bv
        qh = q.reshape(B, S, H, DH).transpose(0, 2, 1, 3)
        kh = k.reshape(B, S, H, DH).transpose(0, 2, 1, 3)
        vh = v.reshape(B, S, H, DH).transpose(0, 2, 1, 3)
        sc = jnp.einsum("bhqd,bhkd->bhqk", qh, kh) / (DH ** 0.5)
        p = jax.nn.softmax(sc, axis=-1)
        ctx = jnp.einsum("bhqk,bhkd->bhqd", p, vh).transpose(0, 2, 1, 3).reshape(B, S, D)
        attn = ctx @ wo + bo
        y = ln(h + attn, g1, be1)
        ff = jnp.maximum(y @ w1 + b1, 0.0) @ w2 + b2
        h = ln(y + ff, g2, be2)
    return h


def make_layer_params(key):
    ks = jax.random.split(key, 16)
    std = 0.02

    def nrm(k, shape, s=std):
        return jax.random.normal(k, shape, jnp.float32) * s

    wq = nrm(ks[0], (D, D)); wk = nrm(ks[1], (D, D))
    wv = nrm(ks[2], (D, D)); wo = nrm(ks[3], (D, D))
    w1 = nrm(ks[4], (D, F)); w2 = nrm(ks[5], (F, D))
    bq = nrm(ks[6], (1, D)); bk = nrm(ks[7], (1, D))
    bv = nrm(ks[8], (1, D)); bo = nrm(ks[9], (1, D))
    b1 = nrm(ks[10], (1, F)); b2 = nrm(ks[11], (1, D))
    g1 = 1.0 + nrm(ks[12], (1, D)); be1 = nrm(ks[13], (1, D))
    g2 = 1.0 + nrm(ks[14], (1, D)); be2 = nrm(ks[15], (1, D))
    return (wq, bq, wk, bk, wv, bv, wo, bo,
            g1, be1, w1, b1, w2, b2, g2, be2)


if __name__ == "__main__":
    key = jax.random.PRNGKey(0)
    kx, kp = jax.random.split(key)
    x = jax.random.normal(kx, (B, S, D), jnp.float32)
    layer_keys = jax.random.split(kp, NUM_LAYERS)
    layer_params = tuple(make_layer_params(k) for k in layer_keys)

    out = jax.block_until_ready(transformer_encoder(x, layer_params))
    ref = reference(x, layer_params)

    assert out.shape == (B, S, D)
    # approx=True softmax reciprocal (EUP path) adds ~1e-4 relative error per
    # layer; allow a few e-3 after two stacked layers.
    assert jnp.allclose(out, ref, atol=5e-3, rtol=5e-3), "mismatch vs reference"
    print("KERNEL_OK")
</pallas_src>

<mosaic_0001>
module attributes {stable_mosaic.version = 11 : i64} {
  func.func @encoder_layer_kernel(%arg0: memref<16x32xf32, #tpu.memory_space<vmem>>, %arg1: memref<32x96xf32, #tpu.memory_space<vmem>>, %arg2: memref<1x96xf32, #tpu.memory_space<vmem>>, %arg3: memref<32x32xf32, #tpu.memory_space<vmem>>, %arg4: memref<32x64xf32, #tpu.memory_space<vmem>>, %arg5: memref<1x64xf32, #tpu.memory_space<vmem>>, %arg6: memref<64x32xf32, #tpu.memory_space<vmem>>, %arg7: memref<6x32xf32, #tpu.memory_space<vmem>>, %arg8: memref<16x32xf32, #tpu.memory_space<vmem>>) attributes {dimension_semantics = [], scalar_prefetch = 0 : i64, scratch_operands = 0 : i64, tpu.core_type = #tpu.core_type<tc>} {
    %c0 = arith.constant 0 : index
    %c0_0 = arith.constant 0 : index
    %0 = vector.load %arg0[%c0, %c0_0] : memref<16x32xf32, #tpu.memory_space<vmem>>, vector<16x32xf32>
    %c0_1 = arith.constant 0 : index
    %c0_2 = arith.constant 0 : index
    %1 = vector.load %arg1[%c0_1, %c0_2] : memref<32x96xf32, #tpu.memory_space<vmem>>, vector<32x96xf32>
    %cst = arith.constant dense<0.000000e+00> : vector<16x96xf32>
    %2 = tpu.matmul %0, %1, %cst {dimension_numbers = #tpu.dot_dimension_numbers<[1], [0], [0], [1], [0, 0, 1, 1], [], []>} : vector<16x32xf32>, vector<32x96xf32>, vector<16x96xf32> -> vector<16x96xf32>
    %c0_3 = arith.constant 0 : index
    %c0_4 = arith.constant 0 : index
    %3 = vector.load %arg2[%c0_3, %c0_4] : memref<1x96xf32, #tpu.memory_space<vmem>>, vector<1x96xf32>
    %4 = vector.broadcast %3 : vector<1x96xf32> to vector<16x96xf32>
    %5 = arith.addf %2, %4 : vector<16x96xf32>
    %c0_5 = arith.constant 0 : index
    %c0_6 = arith.constant 0 : index
    %6 = vector.load %arg3[%c0_5, %c0_6] : memref<32x32xf32, #tpu.memory_space<vmem>>, vector<32x32xf32>
    %cst_7 = arith.constant 0.000000e+00 : f32
    %7 = vector.broadcast %cst_7 : f32 to vector<8x32xf32>
    %8 = vector.extract_strided_slice %5 {offsets = [0, 0], sizes = [8, 8], strides = [1, 1]} : vector<16x96xf32> to vector<8x8xf32>
    %9 = vector.extract_strided_slice %5 {offsets = [0, 32], sizes = [8, 8], strides = [1, 1]} : vector<16x96xf32> to vector<8x8xf32>
    %10 = vector.extract_strided_slice %5 {offsets = [0, 64], sizes = [8, 8], strides = [1, 1]} : vector<16x96xf32> to vector<8x8xf32>
    %11 = tpu.transpose %9, [1, 0] : vector<8x8xf32> -> vector<8x8xf32>
    %cst_8 = arith.constant dense<0.000000e+00> : vector<8x8xf32>
    %12 = tpu.matmul %8, %11, %cst_8 {dimension_numbers = #tpu.dot_dimension_numbers<[1], [0], [0], [1], [0, 0, 1, 1], [], []>} : vector<8x8xf32>, vector<8x8xf32>, vector<8x8xf32> -> vector<8x8xf32>
    %cst_9 = arith.constant 0.353553385 : f32
    %13 = vector.broadcast %cst_9 : f32 to vector<8x8xf32>
    %14 = arith.mulf %12, %13 : vector<8x8xf32>
    %cst_10 = arith.constant dense<0xFF800000> : vector<8xf32>
    %15 = vector.multi_reduction <maximumf>, %14, %cst_10 [1] : vector<8x8xf32> to vector<8xf32>
    %16 = vector.shape_cast %15 : vector<8xf32> to vector<8x1xf32>
    %17 = vector.broadcast %16 : vector<8x1xf32> to vector<8x8xf32>
    %18 = arith.subf %14, %17 : vector<8x8xf32>
    %19 = math.exp %18 : vector<8x8xf32>
    %cst_11 = arith.constant dense<0.000000e+00> : vector<8xf32>
    %20 = vector.multi_reduction <add>, %19, %cst_11 [1] : vector<8x8xf32> to vector<8xf32>
    %21 = vector.shape_cast %20 : vector<8xf32> to vector<8x1xf32>
    %22 = tpu.reciprocal %21 {approx = true} : vector<8x1xf32> -> vector<8x1xf32>
    %23 = vector.broadcast %22 : vector<8x1xf32> to vector<8x8xf32>
    %24 = arith.mulf %19, %23 : vector<8x8xf32>
    %cst_12 = arith.constant dense<0.000000e+00> : vector<8x8xf32>
    %25 = tpu.matmul %24, %10, %cst_12 {dimension_numbers = #tpu.dot_dimension_numbers<[1], [0], [0], [1], [0, 0, 1, 1], [], []>} : vector<8x8xf32>, vector<8x8xf32>, vector<8x8xf32> -> vector<8x8xf32>
    %26 = vector.extract_strided_slice %6 {offsets = [0, 0], sizes = [8, 32], strides = [1, 1]} : vector<32x32xf32> to vector<8x32xf32>
    %cst_13 = arith.constant dense<0.000000e+00> : vector<8x32xf32>
    %27 = tpu.matmul %25, %26, %cst_13 {dimension_numbers = #tpu.dot_dimension_numbers<[1], [0], [0], [1], [0, 0, 1, 1], [], []>} : vector<8x8xf32>, vector<8x32xf32>, vector<8x32xf32> -> vector<8x32xf32>
    %28 = arith.addf %7, %27 : vector<8x32xf32>
    %29 = vector.extract_strided_slice %5 {offsets = [0, 8], sizes = [8, 8], strides = [1, 1]} : vector<16x96xf32> to vector<8x8xf32>
    %30 = vector.extract_strided_slice %5 {offsets = [0, 40], sizes = [8, 8], strides = [1, 1]} : vector<16x96xf32> to vector<8x8xf32>
    %31 = vector.extract_strided_slice %5 {offsets = [0, 72], sizes = [8, 8], strides = [1, 1]} : vector<16x96xf32> to vector<8x8xf32>
    %32 = tpu.transpose %30, [1, 0] : vector<8x8xf32> -> vector<8x8xf32>
    %cst_14 = arith.constant dense<0.000000e+00> : vector<8x8xf32>
    %33 = tpu.matmul %29, %32, %cst_14 {dimension_numbers = #tpu.dot_dimension_numbers<[1], [0], [0], [1], [0, 0, 1, 1], [], []>} : vector<8x8xf32>, vector<8x8xf32>, vector<8x8xf32> -> vector<8x8xf32>
    %cst_15 = arith.constant 0.353553385 : f32
    %34 = vector.broadcast %cst_15 : f32 to vector<8x8xf32>
    %35 = arith.mulf %33, %34 : vector<8x8xf32>
    %cst_16 = arith.constant dense<0xFF800000> : vector<8xf32>
    %36 = vector.multi_reduction <maximumf>, %35, %cst_16 [1] : vector<8x8xf32> to vector<8xf32>
    %37 = vector.shape_cast %36 : vector<8xf32> to vector<8x1xf32>
    %38 = vector.broadcast %37 : vector<8x1xf32> to vector<8x8xf32>
    %39 = arith.subf %35, %38 : vector<8x8xf32>
    %40 = math.exp %39 : vector<8x8xf32>
    %cst_17 = arith.constant dense<0.000000e+00> : vector<8xf32>
    %41 = vector.multi_reduction <add>, %40, %cst_17 [1] : vector<8x8xf32> to vector<8xf32>
    %42 = vector.shape_cast %41 : vector<8xf32> to vector<8x1xf32>
    %43 = tpu.reciprocal %42 {approx = true} : vector<8x1xf32> -> vector<8x1xf32>
    %44 = vector.broadcast %43 : vector<8x1xf32> to vector<8x8xf32>
    %45 = arith.mulf %40, %44 : vector<8x8xf32>
    %cst_18 = arith.constant dense<0.000000e+00> : vector<8x8xf32>
    %46 = tpu.matmul %45, %31, %cst_18 {dimension_numbers = #tpu.dot_dimension_numbers<[1], [0], [0], [1], [0, 0, 1, 1], [], []>} : vector<8x8xf32>, vector<8x8xf32>, vector<8x8xf32> -> vector<8x8xf32>
    %47 = vector.extract_strided_slice %6 {offsets = [8, 0], sizes = [8, 32], strides = [1, 1]} : vector<32x32xf32> to vector<8x32xf32>
    %cst_19 = arith.constant dense<0.000000e+00> : vector<8x32xf32>
    %48 = tpu.matmul %46, %47, %cst_19 {dimension_numbers = #tpu.dot_dimension_numbers<[1], [0], [0], [1], [0, 0, 1, 1], [], []>} : vector<8x8xf32>, vector<8x32xf32>, vector<8x32xf32> -> vector<8x32xf32>
    %49 = arith.addf %28, %48 : vector<8x32xf32>
    %50 = vector.extract_strided_slice %5 {offsets = [0, 16], sizes = [8, 8], strides = [1, 1]} : vector<16x96xf32> to vector<8x8xf32>
    %51 = vector.extract_strided_slice %5 {offsets = [0, 48], sizes = [8, 8], strides = [1, 1]} : vector<16x96xf32> to vector<8x8xf32>
    %52 = vector.extract_strided_slice %5 {offsets = [0, 80], sizes = [8, 8], strides = [1, 1]} : vector<16x96xf32> to vector<8x8xf32>
    %53 = tpu.transpose %51, [1, 0] : vector<8x8xf32> -> vector<8x8xf32>
    %cst_20 = arith.constant dense<0.000000e+00> : vector<8x8xf32>
    %54 = tpu.matmul %50, %53, %cst_20 {dimension_numbers = #tpu.dot_dimension_numbers<[1], [0], [0], [1], [0, 0, 1, 1], [], []>} : vector<8x8xf32>, vector<8x8xf32>, vector<8x8xf32> -> vector<8x8xf32>
    %cst_21 = arith.constant 0.353553385 : f32
    %55 = vector.broadcast %cst_21 : f32 to vector<8x8xf32>
    %56 = arith.mulf %54, %55 : vector<8x8xf32>
    %cst_22 = arith.constant dense<0xFF800000> : vector<8xf32>
    %57 = vector.multi_reduction <maximumf>, %56, %cst_22 [1] : vector<8x8xf32> to vector<8xf32>
    %58 = vector.shape_cast %57 : vector<8xf32> to vector<8x1xf32>
    %59 = vector.broadcast %58 : vector<8x1xf32> to vector<8x8xf32>
    %60 = arith.subf %56, %59 : vector<8x8xf32>
    %61 = math.exp %60 : vector<8x8xf32>
    %cst_23 = arith.constant dense<0.000000e+00> : vector<8xf32>
    %62 = vector.multi_reduction <add>, %61, %cst_23 [1] : vector<8x8xf32> to vector<8xf32>
    %63 = vector.shape_cast %62 : vector<8xf32> to vector<8x1xf32>
    %64 = tpu.reciprocal %63 {approx = true} : vector<8x1xf32> -> vector<8x1xf32>
    %65 = vector.broadcast %64 : vector<8x1xf32> to vector<8x8xf32>
    %66 = arith.mulf %61, %65 : vector<8x8xf32>
    %cst_24 = arith.constant dense<0.000000e+00> : vector<8x8xf32>
    %67 = tpu.matmul %66, %52, %cst_24 {dimension_numbers = #tpu.dot_dimension_numbers<[1], [0], [0], [1], [0, 0, 1, 1], [], []>} : vector<8x8xf32>, vector<8x8xf32>, vector<8x8xf32> -> vector<8x8xf32>
    %68 = vector.extract_strided_slice %6 {offsets = [16, 0], sizes = [8, 32], strides = [1, 1]} : vector<32x32xf32> to vector<8x32xf32>
    %cst_25 = arith.constant dense<0.000000e+00> : vector<8x32xf32>
    %69 = tpu.matmul %67, %68, %cst_25 {dimension_numbers = #tpu.dot_dimension_numbers<[1], [0], [0], [1], [0, 0, 1, 1], [], []>} : vector<8x8xf32>, vector<8x32xf32>, vector<8x32xf32> -> vector<8x32xf32>
    %70 = arith.addf %49, %69 : vector<8x32xf32>
    %71 = vector.extract_strided_slice %5 {offsets = [0, 24], sizes = [8, 8], strides = [1, 1]} : vector<16x96xf32> to vector<8x8xf32>
    %72 = vector.extract_strided_slice %5 {offsets = [0, 56], sizes = [8, 8], strides = [1, 1]} : vector<16x96xf32> to vector<8x8xf32>
    %73 = vector.extract_strided_slice %5 {offsets = [0, 88], sizes = [8, 8], strides = [1, 1]} : vector<16x96xf32> to vector<8x8xf32>
    %74 = tpu.transpose %72, [1, 0] : vector<8x8xf32> -> vector<8x8xf32>
    %cst_26 = arith.constant dense<0.000000e+00> : vector<8x8xf32>
    %75 = tpu.matmul %71, %74, %cst_26 {dimension_numbers = #tpu.dot_dimension_numbers<[1], [0], [0], [1], [0, 0, 1, 1], [], []>} : vector<8x8xf32>, vector<8x8xf32>, vector<8x8xf32> -> vector<8x8xf32>
    %cst_27 = arith.constant 0.353553385 : f32
    %76 = vector.broadcast %cst_27 : f32 to vector<8x8xf32>
    %77 = arith.mulf %75, %76 : vector<8x8xf32>
    %cst_28 = arith.constant dense<0xFF800000> : vector<8xf32>
    %78 = vector.multi_reduction <maximumf>, %77, %cst_28 [1] : vector<8x8xf32> to vector<8xf32>
    %79 = vector.shape_cast %78 : vector<8xf32> to vector<8x1xf32>
    %80 = vector.broadcast %79 : vector<8x1xf32> to vector<8x8xf32>
    %81 = arith.subf %77, %80 : vector<8x8xf32>
    %82 = math.exp %81 : vector<8x8xf32>
    %cst_29 = arith.constant dense<0.000000e+00> : vector<8xf32>
    %83 = vector.multi_reduction <add>, %82, %cst_29 [1] : vector<8x8xf32> to vector<8xf32>
    %84 = vector.shape_cast %83 : vector<8xf32> to vector<8x1xf32>
    %85 = tpu.reciprocal %84 {approx = true} : vector<8x1xf32> -> vector<8x1xf32>
    %86 = vector.broadcast %85 : vector<8x1xf32> to vector<8x8xf32>
    %87 = arith.mulf %82, %86 : vector<8x8xf32>
    %cst_30 = arith.constant dense<0.000000e+00> : vector<8x8xf32>
    %88 = tpu.matmul %87, %73, %cst_30 {dimension_numbers = #tpu.dot_dimension_numbers<[1], [0], [0], [1], [0, 0, 1, 1], [], []>} : vector<8x8xf32>, vector<8x8xf32>, vector<8x8xf32> -> vector<8x8xf32>
    %89 = vector.extract_strided_slice %6 {offsets = [24, 0], sizes = [8, 32], strides = [1, 1]} : vector<32x32xf32> to vector<8x32xf32>
    %cst_31 = arith.constant dense<0.000000e+00> : vector<8x32xf32>
    %90 = tpu.matmul %88, %89, %cst_31 {dimension_numbers = #tpu.dot_dimension_numbers<[1], [0], [0], [1], [0, 0, 1, 1], [], []>} : vector<8x8xf32>, vector<8x32xf32>, vector<8x32xf32> -> vector<8x32xf32>
    %91 = arith.addf %70, %90 : vector<8x32xf32>
    %cst_32 = arith.constant 0.000000e+00 : f32
    %92 = vector.broadcast %cst_32 : f32 to vector<8x32xf32>
    %93 = vector.extract_strided_slice %5 {offsets = [8, 0], sizes = [8, 8], strides = [1, 1]} : vector<16x96xf32> to vector<8x8xf32>
    %94 = vector.extract_strided_slice %5 {offsets = [8, 32], sizes = [8, 8], strides = [1, 1]} : vector<16x96xf32> to vector<8x8xf32>
    %95 = vector.extract_strided_slice %5 {offsets = [8, 64], sizes = [8, 8], strides = [1, 1]} : vector<16x96xf32> to vector<8x8xf32>
    %96 = tpu.transpose %94, [1, 0] : vector<8x8xf32> -> vector<8x8xf32>
    %cst_33 = arith.constant dense<0.000000e+00> : vector<8x8xf32>
    %97 = tpu.matmul %93, %96, %cst_33 {dimension_numbers = #tpu.dot_dimension_numbers<[1], [0], [0], [1], [0, 0, 1, 1], [], []>} : vector<8x8xf32>, vector<8x8xf32>, vector<8x8xf32> -> vector<8x8xf32>
    %cst_34 = arith.constant 0.353553385 : f32
    %98 = vector.broadcast %cst_34 : f32 to vector<8x8xf32>
    %99 = arith.mulf %97, %98 : vector<8x8xf32>
    %cst_35 = arith.constant dense<0xFF800000> : vector<8xf32>
    %100 = vector.multi_reduction <maximumf>, %99, %cst_35 [1] : vector<8x8xf32> to vector<8xf32>
    %101 = vector.shape_cast %100 : vector<8xf32> to vector<8x1xf32>
    %102 = vector.broadcast %101 : vector<8x1xf32> to vector<8x8xf32>
    %103 = arith.subf %99, %102 : vector<8x8xf32>
    %104 = math.exp %103 : vector<8x8xf32>
    %cst_36 = arith.constant dense<0.000000e+00> : vector<8xf32>
    %105 = vector.multi_reduction <add>, %104, %cst_36 [1] : vector<8x8xf32> to vector<8xf32>
    %106 = vector.shape_cast %105 : vector<8xf32> to vector<8x1xf32>
    %107 = tpu.reciprocal %106 {approx = true} : vector<8x1xf32> -> vector<8x1xf32>
    %108 = vector.broadcast %107 : vector<8x1xf32> to vector<8x8xf32>
    %109 = arith.mulf %104, %108 : vector<8x8xf32>
    %cst_37 = arith.constant dense<0.000000e+00> : vector<8x8xf32>
    %110 = tpu.matmul %109, %95, %cst_37 {dimension_numbers = #tpu.dot_dimension_numbers<[1], [0], [0], [1], [0, 0, 1, 1], [], []>} : vector<8x8xf32>, vector<8x8xf32>, vector<8x8xf32> -> vector<8x8xf32>
    %111 = vector.extract_strided_slice %6 {offsets = [0, 0], sizes = [8, 32], strides = [1, 1]} : vector<32x32xf32> to vector<8x32xf32>
    %cst_38 = arith.constant dense<0.000000e+00> : vector<8x32xf32>
    %112 = tpu.matmul %110, %111, %cst_38 {dimension_numbers = #tpu.dot_dimension_numbers<[1], [0], [0], [1], [0, 0, 1, 1], [], []>} : vector<8x8xf32>, vector<8x32xf32>, vector<8x32xf32> -> vector<8x32xf32>
    %113 = arith.addf %92, %112 : vector<8x32xf32>
    %114 = vector.extract_strided_slice %5 {offsets = [8, 8], sizes = [8, 8], strides = [1, 1]} : vector<16x96xf32> to vector<8x8xf32>
    %115 = vector.extract_strided_slice %5 {offsets = [8, 40], sizes = [8, 8], strides = [1, 1]} : vector<16x96xf32> to vector<8x8xf32>
    %116 = vector.extract_strided_slice %5 {offsets = [8, 72], sizes = [8, 8], strides = [1, 1]} : vector<16x96xf32> to vector<8x8xf32>
    %117 = tpu.transpose %115, [1, 0] : vector<8x8xf32> -> vector<8x8xf32>
    %cst_39 = arith.constant dense<0.000000e+00> : vector<8x8xf32>
    %118 = tpu.matmul %114, %117, %cst_39 {dimension_numbers = #tpu.dot_dimension_numbers<[1], [0], [0], [1], [0, 0, 1, 1], [], []>} : vector<8x8xf32>, vector<8x8xf32>, vector<8x8xf32> -> vector<8x8xf32>
    %cst_40 = arith.constant 0.353553385 : f32
    %119 = vector.broadcast %cst_40 : f32 to vector<8x8xf32>
    %120 = arith.mulf %118, %119 : vector<8x8xf32>
    %cst_41 = arith.constant dense<0xFF800000> : vector<8xf32>
    %121 = vector.multi_reduction <maximumf>, %120, %cst_41 [1] : vector<8x8xf32> to vector<8xf32>
    %122 = vector.shape_cast %121 : vector<8xf32> to vector<8x1xf32>
    %123 = vector.broadcast %122 : vector<8x1xf32> to vector<8x8xf32>
    %124 = arith.subf %120, %123 : vector<8x8xf32>
    %125 = math.exp %124 : vector<8x8xf32>
    %cst_42 = arith.constant dense<0.000000e+00> : vector<8xf32>
    %126 = vector.multi_reduction <add>, %125, %cst_42 [1] : vector<8x8xf32> to vector<8xf32>
    %127 = vector.shape_cast %126 : vector<8xf32> to vector<8x1xf32>
    %128 = tpu.reciprocal %127 {approx = true} : vector<8x1xf32> -> vector<8x1xf32>
    %129 = vector.broadcast %128 : vector<8x1xf32> to vector<8x8xf32>
    %130 = arith.mulf %125, %129 : vector<8x8xf32>
    %cst_43 = arith.constant dense<0.000000e+00> : vector<8x8xf32>
    %131 = tpu.matmul %130, %116, %cst_43 {dimension_numbers = #tpu.dot_dimension_numbers<[1], [0], [0], [1], [0, 0, 1, 1], [], []>} : vector<8x8xf32>, vector<8x8xf32>, vector<8x8xf32> -> vector<8x8xf32>
    %132 = vector.extract_strided_slice %6 {offsets = [8, 0], sizes = [8, 32], strides = [1, 1]} : vector<32x32xf32> to vector<8x32xf32>
    %cst_44 = arith.constant dense<0.000000e+00> : vector<8x32xf32>
    %133 = tpu.matmul %131, %132, %cst_44 {dimension_numbers = #tpu.dot_dimension_numbers<[1], [0], [0], [1], [0, 0, 1, 1], [], []>} : vector<8x8xf32>, vector<8x32xf32>, vector<8x32xf32> -> vector<8x32xf32>
    %134 = arith.addf %113, %133 : vector<8x32xf32>
    %135 = vector.extract_strided_slice %5 {offsets = [8, 16], sizes = [8, 8], strides = [1, 1]} : vector<16x96xf32> to vector<8x8xf32>
    %136 = vector.extract_strided_slice %5 {offsets = [8, 48], sizes = [8, 8], strides = [1, 1]} : vector<16x96xf32> to vector<8x8xf32>
    %137 = vector.extract_strided_slice %5 {offsets = [8, 80], sizes = [8, 8], strides = [1, 1]} : vector<16x96xf32> to vector<8x8xf32>
    %138 = tpu.transpose %136, [1, 0] : vector<8x8xf32> -> vector<8x8xf32>
    %cst_45 = arith.constant dense<0.000000e+00> : vector<8x8xf32>
    %139 = tpu.matmul %135, %138, %cst_45 {dimension_numbers = #tpu.dot_dimension_numbers<[1], [0], [0], [1], [0, 0, 1, 1], [], []>} : vector<8x8xf32>, vector<8x8xf32>, vector<8x8xf32> -> vector<8x8xf32>
    %cst_46 = arith.constant 0.353553385 : f32
    %140 = vector.broadcast %cst_46 : f32 to vector<8x8xf32>
    %141 = arith.mulf %139, %140 : vector<8x8xf32>
    %cst_47 = arith.constant dense<0xFF800000> : vector<8xf32>
    %142 = vector.multi_reduction <maximumf>, %141, %cst_47 [1] : vector<8x8xf32> to vector<8xf32>
    %143 = vector.shape_cast %142 : vector<8xf32> to vector<8x1xf32>
    %144 = vector.broadcast %143 : vector<8x1xf32> to vector<8x8xf32>
    %145 = arith.subf %141, %144 : vector<8x8xf32>
    %146 = math.exp %145 : vector<8x8xf32>
    %cst_48 = arith.constant dense<0.000000e+00> : vector<8xf32>
    %147 = vector.multi_reduction <add>, %146, %cst_48 [1] : vector<8x8xf32> to vector<8xf32>
    %148 = vector.shape_cast %147 : vector<8xf32> to vector<8x1xf32>
    %149 = tpu.reciprocal %148 {approx = true} : vector<8x1xf32> -> vector<8x1xf32>
    %150 = vector.broadcast %149 : vector<8x1xf32> to vector<8x8xf32>
    %151 = arith.mulf %146, %150 : vector<8x8xf32>
    %cst_49 = arith.constant dense<0.000000e+00> : vector<8x8xf32>
    %152 = tpu.matmul %151, %137, %cst_49 {dimension_numbers = #tpu.dot_dimension_numbers<[1], [0], [0], [1], [0, 0, 1, 1], [], []>} : vector<8x8xf32>, vector<8x8xf32>, vector<8x8xf32> -> vector<8x8xf32>
    %153 = vector.extract_strided_slice %6 {offsets = [16, 0], sizes = [8, 32], strides = [1, 1]} : vector<32x32xf32> to vector<8x32xf32>
    %cst_50 = arith.constant dense<0.000000e+00> : vector<8x32xf32>
    %154 = tpu.matmul %152, %153, %cst_50 {dimension_numbers = #tpu.dot_dimension_numbers<[1], [0], [0], [1], [0, 0, 1, 1], [], []>} : vector<8x8xf32>, vector<8x32xf32>, vector<8x32xf32> -> vector<8x32xf32>
    %155 = arith.addf %134, %154 : vector<8x32xf32>
    %156 = vector.extract_strided_slice %5 {offsets = [8, 24], sizes = [8, 8], strides = [1, 1]} : vector<16x96xf32> to vector<8x8xf32>
    %157 = vector.extract_strided_slice %5 {offsets = [8, 56], sizes = [8, 8], strides = [1, 1]} : vector<16x96xf32> to vector<8x8xf32>
    %158 = vector.extract_strided_slice %5 {offsets = [8, 88], sizes = [8, 8], strides = [1, 1]} : vector<16x96xf32> to vector<8x8xf32>
    %159 = tpu.transpose %157, [1, 0] : vector<8x8xf32> -> vector<8x8xf32>
    %cst_51 = arith.constant dense<0.000000e+00> : vector<8x8xf32>
    %160 = tpu.matmul %156, %159, %cst_51 {dimension_numbers = #tpu.dot_dimension_numbers<[1], [0], [0], [1], [0, 0, 1, 1], [], []>} : vector<8x8xf32>, vector<8x8xf32>, vector<8x8xf32> -> vector<8x8xf32>
    %cst_52 = arith.constant 0.353553385 : f32
    %161 = vector.broadcast %cst_52 : f32 to vector<8x8xf32>
    %162 = arith.mulf %160, %161 : vector<8x8xf32>
    %cst_53 = arith.constant dense<0xFF800000> : vector<8xf32>
    %163 = vector.multi_reduction <maximumf>, %162, %cst_53 [1] : vector<8x8xf32> to vector<8xf32>
    %164 = vector.shape_cast %163 : vector<8xf32> to vector<8x1xf32>
    %165 = vector.broadcast %164 : vector<8x1xf32> to vector<8x8xf32>
    %166 = arith.subf %162, %165 : vector<8x8xf32>
    %167 = math.exp %166 : vector<8x8xf32>
    %cst_54 = arith.constant dense<0.000000e+00> : vector<8xf32>
    %168 = vector.multi_reduction <add>, %167, %cst_54 [1] : vector<8x8xf32> to vector<8xf32>
    %169 = vector.shape_cast %168 : vector<8xf32> to vector<8x1xf32>
    %170 = tpu.reciprocal %169 {approx = true} : vector<8x1xf32> -> vector<8x1xf32>
    %171 = vector.broadcast %170 : vector<8x1xf32> to vector<8x8xf32>
    %172 = arith.mulf %167, %171 : vector<8x8xf32>
    %cst_55 = arith.constant dense<0.000000e+00> : vector<8x8xf32>
    %173 = tpu.matmul %172, %158, %cst_55 {dimension_numbers = #tpu.dot_dimension_numbers<[1], [0], [0], [1], [0, 0, 1, 1], [], []>} : vector<8x8xf32>, vector<8x8xf32>, vector<8x8xf32> -> vector<8x8xf32>
    %174 = vector.extract_strided_slice %6 {offsets = [24, 0], sizes = [8, 32], strides = [1, 1]} : vector<32x32xf32> to vector<8x32xf32>
    %cst_56 = arith.constant dense<0.000000e+00> : vector<8x32xf32>
    %175 = tpu.matmul %173, %174, %cst_56 {dimension_numbers = #tpu.dot_dimension_numbers<[1], [0], [0], [1], [0, 0, 1, 1], [], []>} : vector<8x8xf32>, vector<8x32xf32>, vector<8x32xf32> -> vector<8x32xf32>
    %176 = arith.addf %155, %175 : vector<8x32xf32>
    %177 = tpu.concatenate %91, %176 in 0 : vector<8x32xf32>, vector<8x32xf32> -> vector<16x32xf32>
    %c0_57 = arith.constant 0 : index
    %c0_58 = arith.constant 0 : index
    %178 = vector.load %arg7[%c0_57, %c0_58] : memref<6x32xf32, #tpu.memory_space<vmem>>, vector<1x32xf32>
    %179 = vector.broadcast %178 : vector<1x32xf32> to vector<16x32xf32>
    %180 = arith.addf %177, %179 : vector<16x32xf32>
    %181 = arith.addf %0, %180 : vector<16x32xf32>
    %c1 = arith.constant 1 : index
    %c0_59 = arith.constant 0 : index
    %182 = vector.load %arg7[%c1, %c0_59] : memref<6x32xf32, #tpu.memory_space<vmem>>, vector<1x32xf32>
    %c2 = arith.constant 2 : index
    %c0_60 = arith.constant 0 : index
    %183 = vector.load %arg7[%c2, %c0_60] : memref<6x32xf32, #tpu.memory_space<vmem>>, vector<1x32xf32>
    %cst_61 = arith.constant dense<0.000000e+00> : vector<16xf32>
    %184 = vector.multi_reduction <add>, %181, %cst_61 [1] : vector<16x32xf32> to vector<16xf32>
    %185 = vector.shape_cast %184 : vector<16xf32> to vector<16x1xf32>
    %cst_62 = arith.constant 3.200000e+01 : f32
    %186 = vector.broadcast %cst_62 : f32 to vector<16x1xf32>
    %187 = arith.divf %185, %186 : vector<16x1xf32>
    %188 = vector.broadcast %187 : vector<16x1xf32> to vector<16x32xf32>
    %189 = arith.subf %181, %188 : vector<16x32xf32>
    %190 = arith.mulf %189, %189 : vector<16x32xf32>
    %cst_63 = arith.constant dense<0.000000e+00> : vector<16xf32>
    %191 = vector.multi_reduction <add>, %190, %cst_63 [1] : vector<16x32xf32> to vector<16xf32>
    %192 = vector.shape_cast %191 : vector<16xf32> to vector<16x1xf32>
    %cst_64 = arith.constant 3.200000e+01 : f32
    %193 = vector.broadcast %cst_64 : f32 to vector<16x1xf32>
    %194 = arith.divf %192, %193 : vector<16x1xf32>
    %cst_65 = arith.constant 9.99999974E-6 : f32
    %195 = vector.broadcast %cst_65 : f32 to vector<16x1xf32>
    %196 = arith.addf %194, %195 : vector<16x1xf32>
    %197 = math.rsqrt %196 : vector<16x1xf32>
    %198 = vector.broadcast %187 : vector<16x1xf32> to vector<16x32xf32>
    %199 = arith.subf %181, %198 : vector<16x32xf32>
    %200 = vector.broadcast %197 : vector<16x1xf32> to vector<16x32xf32>
    %201 = arith.mulf %199, %200 : vector<16x32xf32>
    %202 = vector.broadcast %182 : vector<1x32xf32> to vector<16x32xf32>
    %203 = arith.mulf %201, %202 : vector<16x32xf32>
    %204 = vector.broadcast %183 : vector<1x32xf32> to vector<16x32xf32>
    %205 = arith.addf %203, %204 : vector<16x32xf32>
    %c0_66 = arith.constant 0 : index
    %c0_67 = arith.constant 0 : index
    %206 = vector.load %arg4[%c0_66, %c0_67] : memref<32x64xf32, #tpu.memory_space<vmem>>, vector<32x64xf32>
    %cst_68 = arith.constant dense<0.000000e+00> : vector<16x64xf32>
    %207 = tpu.matmul %205, %206, %cst_68 {dimension_numbers = #tpu.dot_dimension_numbers<[1], [0], [0], [1], [0, 0, 1, 1], [], []>} : vector<16x32xf32>, vector<32x64xf32>, vector<16x64xf32> -> vector<16x64xf32>
    %c0_69 = arith.constant 0 : index
    %c0_70 = arith.constant 0 : index
    %208 = vector.load %arg5[%c0_69, %c0_70] : memref<1x64xf32, #tpu.memory_space<vmem>>, vector<1x64xf32>
    %209 = vector.broadcast %208 : vector<1x64xf32> to vector<16x64xf32>
    %210 = arith.addf %207, %209 : vector<16x64xf32>
    %cst_71 = arith.constant 0.000000e+00 : f32
    %211 = vector.broadcast %cst_71 : f32 to vector<16x64xf32>
    %212 = arith.maximumf %210, %211 : vector<16x64xf32>
    %c0_72 = arith.constant 0 : index
    %c0_73 = arith.constant 0 : index
    %213 = vector.load %arg6[%c0_72, %c0_73] : memref<64x32xf32, #tpu.memory_space<vmem>>, vector<64x32xf32>
    %cst_74 = arith.constant dense<0.000000e+00> : vector<16x32xf32>
    %214 = tpu.matmul %212, %213, %cst_74 {dimension_numbers = #tpu.dot_dimension_numbers<[1], [0], [0], [1], [0, 0, 1, 1], [], []>} : vector<16x64xf32>, vector<64x32xf32>, vector<16x32xf32> -> vector<16x32xf32>
    %c3 = arith.constant 3 : index
    %c0_75 = arith.constant 0 : index
    %215 = vector.load %arg7[%c3, %c0_75] : memref<6x32xf32, #tpu.memory_space<vmem>>, vector<1x32xf32>
    %216 = vector.broadcast %215 : vector<1x32xf32> to vector<16x32xf32>
    %217 = arith.addf %214, %216 : vector<16x32xf32>
    %218 = arith.addf %205, %217 : vector<16x32xf32>
    %c4 = arith.constant 4 : index
    %c0_76 = arith.constant 0 : index
    %219 = vector.load %arg7[%c4, %c0_76] : memref<6x32xf32, #tpu.memory_space<vmem>>, vector<1x32xf32>
    %c5 = arith.constant 5 : index
    %c0_77 = arith.constant 0 : index
    %220 = vector.load %arg7[%c5, %c0_77] : memref<6x32xf32, #tpu.memory_space<vmem>>, vector<1x32xf32>
    %cst_78 = arith.constant dense<0.000000e+00> : vector<16xf32>
    %221 = vector.multi_reduction <add>, %218, %cst_78 [1] : vector<16x32xf32> to vector<16xf32>
    %222 = vector.shape_cast %221 : vector<16xf32> to vector<16x1xf32>
    %cst_79 = arith.constant 3.200000e+01 : f32
    %223 = vector.broadcast %cst_79 : f32 to vector<16x1xf32>
    %224 = arith.divf %222, %223 : vector<16x1xf32>
    %225 = vector.broadcast %224 : vector<16x1xf32> to vector<16x32xf32>
    %226 = arith.subf %218, %225 : vector<16x32xf32>
    %227 = arith.mulf %226, %226 : vector<16x32xf32>
    %cst_80 = arith.constant dense<0.000000e+00> : vector<16xf32>
    %228 = vector.multi_reduction <add>, %227, %cst_80 [1] : vector<16x32xf32> to vector<16xf32>
    %229 = vector.shape_cast %228 : vector<16xf32> to vector<16x1xf32>
    %cst_81 = arith.constant 3.200000e+01 : f32
    %230 = vector.broadcast %cst_81 : f32 to vector<16x1xf32>
    %231 = arith.divf %229, %230 : vector<16x1xf32>
    %cst_82 = arith.constant 9.99999974E-6 : f32
    %232 = vector.broadcast %cst_82 : f32 to vector<16x1xf32>
    %233 = arith.addf %231, %232 : vector<16x1xf32>
    %234 = math.rsqrt %233 : vector<16x1xf32>
    %235 = vector.broadcast %224 : vector<16x1xf32> to vector<16x32xf32>
    %236 = arith.subf %218, %235 : vector<16x32xf32>
    %237 = vector.broadcast %234 : vector<16x1xf32> to vector<16x32xf32>
    %238 = arith.mulf %236, %237 : vector<16x32xf32>
    %239 = vector.broadcast %219 : vector<1x32xf32> to vector<16x32xf32>
    %240 = arith.mulf %238, %239 : vector<16x32xf32>
    %241 = vector.broadcast %220 : vector<1x32xf32> to vector<16x32xf32>
    %242 = arith.addf %240, %241 : vector<16x32xf32>
    %c0_83 = arith.constant 0 : index
    %c0_84 = arith.constant 0 : index
    %243 = vector.load %arg8[%c0_83, %c0_84] : memref<16x32xf32, #tpu.memory_space<vmem>>, vector<16x32xf32>
    tpu.vector_store %arg8[%c0_83, %c0_84], %242 {strides = array<i32>} : memref<16x32xf32, #tpu.memory_space<vmem>>, vector<16x32xf32>,
    return
  }
}

module attributes {stable_mosaic.version = 11 : i64} {
  func.func @encoder_layer_kernel(%arg0: memref<16x32xf32, #tpu.memory_space<vmem>>, %arg1: memref<32x96xf32, #tpu.memory_space<vmem>>, %arg2: memref<1x96xf32, #tpu.memory_space<vmem>>, %arg3: memref<32x32xf32, #tpu.memory_space<vmem>>, %arg4: memref<32x64xf32, #tpu.memory_space<vmem>>, %arg5: memref<1x64xf32, #tpu.memory_space<vmem>>, %arg6: memref<64x32xf32, #tpu.memory_space<vmem>>, %arg7: memref<6x32xf32, #tpu.memory_space<vmem>>, %arg8: memref<16x32xf32, #tpu.memory_space<vmem>>) attributes {dimension_semantics = [], scalar_prefetch = 0 : i64, scratch_operands = 0 : i64, tpu.core_type = #tpu.core_type<tc>} {
    %c0 = arith.constant 0 : index
    %c0_0 = arith.constant 0 : index
    %0 = vector.load %arg0[%c0, %c0_0] : memref<16x32xf32, #tpu.memory_space<vmem>>, vector<16x32xf32>
    %c0_1 = arith.constant 0 : index
    %c0_2 = arith.constant 0 : index
    %1 = vector.load %arg1[%c0_1, %c0_2] : memref<32x96xf32, #tpu.memory_space<vmem>>, vector<32x96xf32>
    %cst = arith.constant dense<0.000000e+00> : vector<16x96xf32>
    %2 = tpu.matmul %0, %1, %cst {dimension_numbers = #tpu.dot_dimension_numbers<[1], [0], [0], [1], [0, 0, 1, 1], [], []>} : vector<16x32xf32>, vector<32x96xf32>, vector<16x96xf32> -> vector<16x96xf32>
    %c0_3 = arith.constant 0 : index
    %c0_4 = arith.constant 0 : index
    %3 = vector.load %arg2[%c0_3, %c0_4] : memref<1x96xf32, #tpu.memory_space<vmem>>, vector<1x96xf32>
    %4 = vector.broadcast %3 : vector<1x96xf32> to vector<16x96xf32>
    %5 = arith.addf %2, %4 : vector<16x96xf32>
    %c0_5 = arith.constant 0 : index
    %c0_6 = arith.constant 0 : index
    %6 = vector.load %arg3[%c0_5, %c0_6] : memref<32x32xf32, #tpu.memory_space<vmem>>, vector<32x32xf32>
    %cst_7 = arith.constant 0.000000e+00 : f32
    %7 = vector.broadcast %cst_7 : f32 to vector<8x32xf32>
    %8 = vector.extract_strided_slice %5 {offsets = [0, 0], sizes = [8, 8], strides = [1, 1]} : vector<16x96xf32> to vector<8x8xf32>
    %9 = vector.extract_strided_slice %5 {offsets = [0, 32], sizes = [8, 8], strides = [1, 1]} : vector<16x96xf32> to vector<8x8xf32>
    %10 = vector.extract_strided_slice %5 {offsets = [0, 64], sizes = [8, 8], strides = [1, 1]} : vector<16x96xf32> to vector<8x8xf32>
    %11 = tpu.transpose %9, [1, 0] : vector<8x8xf32> -> vector<8x8xf32>
    %cst_8 = arith.constant dense<0.000000e+00> : vector<8x8xf32>
    %12 = tpu.matmul %8, %11, %cst_8 {dimension_numbers = #tpu.dot_dimension_numbers<[1], [0], [0], [1], [0, 0, 1, 1], [], []>} : vector<8x8xf32>, vector<8x8xf32>, vector<8x8xf32> -> vector<8x8xf32>
    %cst_9 = arith.constant 0.353553385 : f32
    %13 = vector.broadcast %cst_9 : f32 to vector<8x8xf32>
    %14 = arith.mulf %12, %13 : vector<8x8xf32>
    %cst_10 = arith.constant dense<0xFF800000> : vector<8xf32>
    %15 = vector.multi_reduction <maximumf>, %14, %cst_10 [1] : vector<8x8xf32> to vector<8xf32>
    %16 = vector.shape_cast %15 : vector<8xf32> to vector<8x1xf32>
    %17 = vector.broadcast %16 : vector<8x1xf32> to vector<8x8xf32>
    %18 = arith.subf %14, %17 : vector<8x8xf32>
    %19 = math.exp %18 : vector<8x8xf32>
    %cst_11 = arith.constant dense<0.000000e+00> : vector<8xf32>
    %20 = vector.multi_reduction <add>, %19, %cst_11 [1] : vector<8x8xf32> to vector<8xf32>
    %21 = vector.shape_cast %20 : vector<8xf32> to vector<8x1xf32>
    %22 = tpu.reciprocal %21 {approx = true} : vector<8x1xf32> -> vector<8x1xf32>
    %23 = vector.broadcast %22 : vector<8x1xf32> to vector<8x8xf32>
    %24 = arith.mulf %19, %23 : vector<8x8xf32>
    %cst_12 = arith.constant dense<0.000000e+00> : vector<8x8xf32>
    %25 = tpu.matmul %24, %10, %cst_12 {dimension_numbers = #tpu.dot_dimension_numbers<[1], [0], [0], [1], [0, 0, 1, 1], [], []>} : vector<8x8xf32>, vector<8x8xf32>, vector<8x8xf32> -> vector<8x8xf32>
    %26 = vector.extract_strided_slice %6 {offsets = [0, 0], sizes = [8, 32], strides = [1, 1]} : vector<32x32xf32> to vector<8x32xf32>
    %cst_13 = arith.constant dense<0.000000e+00> : vector<8x32xf32>
    %27 = tpu.matmul %25, %26, %cst_13 {dimension_numbers = #tpu.dot_dimension_numbers<[1], [0], [0], [1], [0, 0, 1, 1], [], []>} : vector<8x8xf32>, vector<8x32xf32>, vector<8x32xf32> -> vector<8x32xf32>
    %28 = arith.addf %7, %27 : vector<8x32xf32>
    %29 = vector.extract_strided_slice %5 {offsets = [0, 8], sizes = [8, 8], strides = [1, 1]} : vector<16x96xf32> to vector<8x8xf32>
    %30 = vector.extract_strided_slice %5 {offsets = [0, 40], sizes = [8, 8], strides = [1, 1]} : vector<16x96xf32> to vector<8x8xf32>
    %31 = vector.extract_strided_slice %5 {offsets = [0, 72], sizes = [8, 8], strides = [1, 1]} : vector<16x96xf32> to vector<8x8xf32>
    %32 = tpu.transpose %30, [1, 0] : vector<8x8xf32> -> vector<8x8xf32>
    %cst_14 = arith.constant dense<0.000000e+00> : vector<8x8xf32>
    %33 = tpu.matmul %29, %32, %cst_14 {dimension_numbers = #tpu.dot_dimension_numbers<[1], [0], [0], [1], [0, 0, 1, 1], [], []>} : vector<8x8xf32>, vector<8x8xf32>, vector<8x8xf32> -> vector<8x8xf32>
    %cst_15 = arith.constant 0.353553385 : f32
    %34 = vector.broadcast %cst_15 : f32 to vector<8x8xf32>
    %35 = arith.mulf %33, %34 : vector<8x8xf32>
    %cst_16 = arith.constant dense<0xFF800000> : vector<8xf32>
    %36 = vector.multi_reduction <maximumf>, %35, %cst_16 [1] : vector<8x8xf32> to vector<8xf32>
    %37 = vector.shape_cast %36 : vector<8xf32> to vector<8x1xf32>
    %38 = vector.broadcast %37 : vector<8x1xf32> to vector<8x8xf32>
    %39 = arith.subf %35, %38 : vector<8x8xf32>
    %40 = math.exp %39 : vector<8x8xf32>
    %cst_17 = arith.constant dense<0.000000e+00> : vector<8xf32>
    %41 = vector.multi_reduction <add>, %40, %cst_17 [1] : vector<8x8xf32> to vector<8xf32>
    %42 = vector.shape_cast %41 : vector<8xf32> to vector<8x1xf32>
    %43 = tpu.reciprocal %42 {approx = true} : vector<8x1xf32> -> vector<8x1xf32>
    %44 = vector.broadcast %43 : vector<8x1xf32> to vector<8x8xf32>
    %45 = arith.mulf %40, %44 : vector<8x8xf32>
    %cst_18 = arith.constant dense<0.000000e+00> : vector<8x8xf32>
    %46 = tpu.matmul %45, %31, %cst_18 {dimension_numbers = #tpu.dot_dimension_numbers<[1], [0], [0], [1], [0, 0, 1, 1], [], []>} : vector<8x8xf32>, vector<8x8xf32>, vector<8x8xf32> -> vector<8x8xf32>
    %47 = vector.extract_strided_slice %6 {offsets = [8, 0], sizes = [8, 32], strides = [1, 1]} : vector<32x32xf32> to vector<8x32xf32>
    %cst_19 = arith.constant dense<0.000000e+00> : vector<8x32xf32>
    %48 = tpu.matmul %46, %47, %cst_19 {dimension_numbers = #tpu.dot_dimension_numbers<[1], [0], [0], [1], [0, 0, 1, 1], [], []>} : vector<8x8xf32>, vector<8x32xf32>, vector<8x32xf32> -> vector<8x32xf32>
    %49 = arith.addf %28, %48 : vector<8x32xf32>
    %50 = vector.extract_strided_slice %5 {offsets = [0, 16], sizes = [8, 8], strides = [1, 1]} : vector<16x96xf32> to vector<8x8xf32>
    %51 = vector.extract_strided_slice %5 {offsets = [0, 48], sizes = [8, 8], strides = [1, 1]} : vector<16x96xf32> to vector<8x8xf32>
    %52 = vector.extract_strided_slice %5 {offsets = [0, 80], sizes = [8, 8], strides = [1, 1]} : vector<16x96xf32> to vector<8x8xf32>
    %53 = tpu.transpose %51, [1, 0] : vector<8x8xf32> -> vector<8x8xf32>
    %cst_20 = arith.constant dense<0.000000e+00> : vector<8x8xf32>
    %54 = tpu.matmul %50, %53, %cst_20 {dimension_numbers = #tpu.dot_dimension_numbers<[1], [0], [0], [1], [0, 0, 1, 1], [], []>} : vector<8x8xf32>, vector<8x8xf32>, vector<8x8xf32> -> vector<8x8xf32>
    %cst_21 = arith.constant 0.353553385 : f32
    %55 = vector.broadcast %cst_21 : f32 to vector<8x8xf32>
    %56 = arith.mulf %54, %55 : vector<8x8xf32>
    %cst_22 = arith.constant dense<0xFF800000> : vector<8xf32>
    %57 = vector.multi_reduction <maximumf>, %56, %cst_22 [1] : vector<8x8xf32> to vector<8xf32>
    %58 = vector.shape_cast %57 : vector<8xf32> to vector<8x1xf32>
    %59 = vector.broadcast %58 : vector<8x1xf32> to vector<8x8xf32>
    %60 = arith.subf %56, %59 : vector<8x8xf32>
    %61 = math.exp %60 : vector<8x8xf32>
    %cst_23 = arith.constant dense<0.000000e+00> : vector<8xf32>
    %62 = vector.multi_reduction <add>, %61, %cst_23 [1] : vector<8x8xf32> to vector<8xf32>
    %63 = vector.shape_cast %62 : vector<8xf32> to vector<8x1xf32>
    %64 = tpu.reciprocal %63 {approx = true} : vector<8x1xf32> -> vector<8x1xf32>
    %65 = vector.broadcast %64 : vector<8x1xf32> to vector<8x8xf32>
    %66 = arith.mulf %61, %65 : vector<8x8xf32>
    %cst_24 = arith.constant dense<0.000000e+00> : vector<8x8xf32>
    %67 = tpu.matmul %66, %52, %cst_24 {dimension_numbers = #tpu.dot_dimension_numbers<[1], [0], [0], [1], [0, 0, 1, 1], [], []>} : vector<8x8xf32>, vector<8x8xf32>, vector<8x8xf32> -> vector<8x8xf32>
    %68 = vector.extract_strided_slice %6 {offsets = [16, 0], sizes = [8, 32], strides = [1, 1]} : vector<32x32xf32> to vector<8x32xf32>
    %cst_25 = arith.constant dense<0.000000e+00> : vector<8x32xf32>
    %69 = tpu.matmul %67, %68, %cst_25 {dimension_numbers = #tpu.dot_dimension_numbers<[1], [0], [0], [1], [0, 0, 1, 1], [], []>} : vector<8x8xf32>, vector<8x32xf32>, vector<8x32xf32> -> vector<8x32xf32>
    %70 = arith.addf %49, %69 : vector<8x32xf32>
    %71 = vector.extract_strided_slice %5 {offsets = [0, 24], sizes = [8, 8], strides = [1, 1]} : vector<16x96xf32> to vector<8x8xf32>
    %72 = vector.extract_strided_slice %5 {offsets = [0, 56], sizes = [8, 8], strides = [1, 1]} : vector<16x96xf32> to vector<8x8xf32>
    %73 = vector.extract_strided_slice %5 {offsets = [0, 88], sizes = [8, 8], strides = [1, 1]} : vector<16x96xf32> to vector<8x8xf32>
    %74 = tpu.transpose %72, [1, 0] : vector<8x8xf32> -> vector<8x8xf32>
    %cst_26 = arith.constant dense<0.000000e+00> : vector<8x8xf32>
    %75 = tpu.matmul %71, %74, %cst_26 {dimension_numbers = #tpu.dot_dimension_numbers<[1], [0], [0], [1], [0, 0, 1, 1], [], []>} : vector<8x8xf32>, vector<8x8xf32>, vector<8x8xf32> -> vector<8x8xf32>
    %cst_27 = arith.constant 0.353553385 : f32
    %76 = vector.broadcast %cst_27 : f32 to vector<8x8xf32>
    %77 = arith.mulf %75, %76 : vector<8x8xf32>
    %cst_28 = arith.constant dense<0xFF800000> : vector<8xf32>
    %78 = vector.multi_reduction <maximumf>, %77, %cst_28 [1] : vector<8x8xf32> to vector<8xf32>
    %79 = vector.shape_cast %78 : vector<8xf32> to vector<8x1xf32>
    %80 = vector.broadcast %79 : vector<8x1xf32> to vector<8x8xf32>
    %81 = arith.subf %77, %80 : vector<8x8xf32>
    %82 = math.exp %81 : vector<8x8xf32>
    %cst_29 = arith.constant dense<0.000000e+00> : vector<8xf32>
    %83 = vector.multi_reduction <add>, %82, %cst_29 [1] : vector<8x8xf32> to vector<8xf32>
    %84 = vector.shape_cast %83 : vector<8xf32> to vector<8x1xf32>
    %85 = tpu.reciprocal %84 {approx = true} : vector<8x1xf32> -> vector<8x1xf32>
    %86 = vector.broadcast %85 : vector<8x1xf32> to vector<8x8xf32>
    %87 = arith.mulf %82, %86 : vector<8x8xf32>
    %cst_30 = arith.constant dense<0.000000e+00> : vector<8x8xf32>
    %88 = tpu.matmul %87, %73, %cst_30 {dimension_numbers = #tpu.dot_dimension_numbers<[1], [0], [0], [1], [0, 0, 1, 1], [], []>} : vector<8x8xf32>, vector<8x8xf32>, vector<8x8xf32> -> vector<8x8xf32>
    %89 = vector.extract_strided_slice %6 {offsets = [24, 0], sizes = [8, 32], strides = [1, 1]} : vector<32x32xf32> to vector<8x32xf32>
    %cst_31 = arith.constant dense<0.000000e+00> : vector<8x32xf32>
    %90 = tpu.matmul %88, %89, %cst_31 {dimension_numbers = #tpu.dot_dimension_numbers<[1], [0], [0], [1], [0, 0, 1, 1], [], []>} : vector<8x8xf32>, vector<8x32xf32>, vector<8x32xf32> -> vector<8x32xf32>
    %91 = arith.addf %70, %90 : vector<8x32xf32>
    %cst_32 = arith.constant 0.000000e+00 : f32
    %92 = vector.broadcast %cst_32 : f32 to vector<8x32xf32>
    %93 = vector.extract_strided_slice %5 {offsets = [8, 0], sizes = [8, 8], strides = [1, 1]} : vector<16x96xf32> to vector<8x8xf32>
    %94 = vector.extract_strided_slice %5 {offsets = [8, 32], sizes = [8, 8], strides = [1, 1]} : vector<16x96xf32> to vector<8x8xf32>
    %95 = vector.extract_strided_slice %5 {offsets = [8, 64], sizes = [8, 8], strides = [1, 1]} : vector<16x96xf32> to vector<8x8xf32>
    %96 = tpu.transpose %94, [1, 0] : vector<8x8xf32> -> vector<8x8xf32>
    %cst_33 = arith.constant dense<0.000000e+00> : vector<8x8xf32>
    %97 = tpu.matmul %93, %96, %cst_33 {dimension_numbers = #tpu.dot_dimension_numbers<[1], [0], [0], [1], [0, 0, 1, 1], [], []>} : vector<8x8xf32>, vector<8x8xf32>, vector<8x8xf32> -> vector<8x8xf32>
    %cst_34 = arith.constant 0.353553385 : f32
    %98 = vector.broadcast %cst_34 : f32 to vector<8x8xf32>
    %99 = arith.mulf %97, %98 : vector<8x8xf32>
    %cst_35 = arith.constant dense<0xFF800000> : vector<8xf32>
    %100 = vector.multi_reduction <maximumf>, %99, %cst_35 [1] : vector<8x8xf32> to vector<8xf32>
    %101 = vector.shape_cast %100 : vector<8xf32> to vector<8x1xf32>
    %102 = vector.broadcast %101 : vector<8x1xf32> to vector<8x8xf32>
    %103 = arith.subf %99, %102 : vector<8x8xf32>
    %104 = math.exp %103 : vector<8x8xf32>
    %cst_36 = arith.constant dense<0.000000e+00> : vector<8xf32>
    %105 = vector.multi_reduction <add>, %104, %cst_36 [1] : vector<8x8xf32> to vector<8xf32>
    %106 = vector.shape_cast %105 : vector<8xf32> to vector<8x1xf32>
    %107 = tpu.reciprocal %106 {approx = true} : vector<8x1xf32> -> vector<8x1xf32>
    %108 = vector.broadcast %107 : vector<8x1xf32> to vector<8x8xf32>
    %109 = arith.mulf %104, %108 : vector<8x8xf32>
    %cst_37 = arith.constant dense<0.000000e+00> : vector<8x8xf32>
    %110 = tpu.matmul %109, %95, %cst_37 {dimension_numbers = #tpu.dot_dimension_numbers<[1], [0], [0], [1], [0, 0, 1, 1], [], []>} : vector<8x8xf32>, vector<8x8xf32>, vector<8x8xf32> -> vector<8x8xf32>
    %111 = vector.extract_strided_slice %6 {offsets = [0, 0], sizes = [8, 32], strides = [1, 1]} : vector<32x32xf32> to vector<8x32xf32>
    %cst_38 = arith.constant dense<0.000000e+00> : vector<8x32xf32>
    %112 = tpu.matmul %110, %111, %cst_38 {dimension_numbers = #tpu.dot_dimension_numbers<[1], [0], [0], [1], [0, 0, 1, 1], [], []>} : vector<8x8xf32>, vector<8x32xf32>, vector<8x32xf32> -> vector<8x32xf32>
    %113 = arith.addf %92, %112 : vector<8x32xf32>
    %114 = vector.extract_strided_slice %5 {offsets = [8, 8], sizes = [8, 8], strides = [1, 1]} : vector<16x96xf32> to vector<8x8xf32>
    %115 = vector.extract_strided_slice %5 {offsets = [8, 40], sizes = [8, 8], strides = [1, 1]} : vector<16x96xf32> to vector<8x8xf32>
    %116 = vector.extract_strided_slice %5 {offsets = [8, 72], sizes = [8, 8], strides = [1, 1]} : vector<16x96xf32> to vector<8x8xf32>
    %117 = tpu.transpose %115, [1, 0] : vector<8x8xf32> -> vector<8x8xf32>
    %cst_39 = arith.constant dense<0.000000e+00> : vector<8x8xf32>
    %118 = tpu.matmul %114, %117, %cst_39 {dimension_numbers = #tpu.dot_dimension_numbers<[1], [0], [0], [1], [0, 0, 1, 1], [], []>} : vector<8x8xf32>, vector<8x8xf32>, vector<8x8xf32> -> vector<8x8xf32>
    %cst_40 = arith.constant 0.353553385 : f32
    %119 = vector.broadcast %cst_40 : f32 to vector<8x8xf32>
    %120 = arith.mulf %118, %119 : vector<8x8xf32>
    %cst_41 = arith.constant dense<0xFF800000> : vector<8xf32>
    %121 = vector.multi_reduction <maximumf>, %120, %cst_41 [1] : vector<8x8xf32> to vector<8xf32>
    %122 = vector.shape_cast %121 : vector<8xf32> to vector<8x1xf32>
    %123 = vector.broadcast %122 : vector<8x1xf32> to vector<8x8xf32>
    %124 = arith.subf %120, %123 : vector<8x8xf32>
    %125 = math.exp %124 : vector<8x8xf32>
    %cst_42 = arith.constant dense<0.000000e+00> : vector<8xf32>
    %126 = vector.multi_reduction <add>, %125, %cst_42 [1] : vector<8x8xf32> to vector<8xf32>
    %127 = vector.shape_cast %126 : vector<8xf32> to vector<8x1xf32>
    %128 = tpu.reciprocal %127 {approx = true} : vector<8x1xf32> -> vector<8x1xf32>
    %129 = vector.broadcast %128 : vector<8x1xf32> to vector<8x8xf32>
    %130 = arith.mulf %125, %129 : vector<8x8xf32>
    %cst_43 = arith.constant dense<0.000000e+00> : vector<8x8xf32>
    %131 = tpu.matmul %130, %116, %cst_43 {dimension_numbers = #tpu.dot_dimension_numbers<[1], [0], [0], [1], [0, 0, 1, 1], [], []>} : vector<8x8xf32>, vector<8x8xf32>, vector<8x8xf32> -> vector<8x8xf32>
    %132 = vector.extract_strided_slice %6 {offsets = [8, 0], sizes = [8, 32], strides = [1, 1]} : vector<32x32xf32> to vector<8x32xf32>
    %cst_44 = arith.constant dense<0.000000e+00> : vector<8x32xf32>
    %133 = tpu.matmul %131, %132, %cst_44 {dimension_numbers = #tpu.dot_dimension_numbers<[1], [0], [0], [1], [0, 0, 1, 1], [], []>} : vector<8x8xf32>, vector<8x32xf32>, vector<8x32xf32> -> vector<8x32xf32>
    %134 = arith.addf %113, %133 : vector<8x32xf32>
    %135 = vector.extract_strided_slice %5 {offsets = [8, 16], sizes = [8, 8], strides = [1, 1]} : vector<16x96xf32> to vector<8x8xf32>
    %136 = vector.extract_strided_slice %5 {offsets = [8, 48], sizes = [8, 8], strides = [1, 1]} : vector<16x96xf32> to vector<8x8xf32>
    %137 = vector.extract_strided_slice %5 {offsets = [8, 80], sizes = [8, 8], strides = [1, 1]} : vector<16x96xf32> to vector<8x8xf32>
    %138 = tpu.transpose %136, [1, 0] : vector<8x8xf32> -> vector<8x8xf32>
    %cst_45 = arith.constant dense<0.000000e+00> : vector<8x8xf32>
    %139 = tpu.matmul %135, %138, %cst_45 {dimension_numbers = #tpu.dot_dimension_numbers<[1], [0], [0], [1], [0, 0, 1, 1], [], []>} : vector<8x8xf32>, vector<8x8xf32>, vector<8x8xf32> -> vector<8x8xf32>
    %cst_46 = arith.constant 0.353553385 : f32
    %140 = vector.broadcast %cst_46 : f32 to vector<8x8xf32>
    %141 = arith.mulf %139, %140 : vector<8x8xf32>
    %cst_47 = arith.constant dense<0xFF800000> : vector<8xf32>
    %142 = vector.multi_reduction <maximumf>, %141, %cst_47 [1] : vector<8x8xf32> to vector<8xf32>
    %143 = vector.shape_cast %142 : vector<8xf32> to vector<8x1xf32>
    %144 = vector.broadcast %143 : vector<8x1xf32> to vector<8x8xf32>
    %145 = arith.subf %141, %144 : vector<8x8xf32>
    %146 = math.exp %145 : vector<8x8xf32>
    %cst_48 = arith.constant dense<0.000000e+00> : vector<8xf32>
    %147 = vector.multi_reduction <add>, %146, %cst_48 [1] : vector<8x8xf32> to vector<8xf32>
    %148 = vector.shape_cast %147 : vector<8xf32> to vector<8x1xf32>
    %149 = tpu.reciprocal %148 {approx = true} : vector<8x1xf32> -> vector<8x1xf32>
    %150 = vector.broadcast %149 : vector<8x1xf32> to vector<8x8xf32>
    %151 = arith.mulf %146, %150 : vector<8x8xf32>
    %cst_49 = arith.constant dense<0.000000e+00> : vector<8x8xf32>
    %152 = tpu.matmul %151, %137, %cst_49 {dimension_numbers = #tpu.dot_dimension_numbers<[1], [0], [0], [1], [0, 0, 1, 1], [], []>} : vector<8x8xf32>, vector<8x8xf32>, vector<8x8xf32> -> vector<8x8xf32>
    %153 = vector.extract_strided_slice %6 {offsets = [16, 0], sizes = [8, 32], strides = [1, 1]} : vector<32x32xf32> to vector<8x32xf32>
    %cst_50 = arith.constant dense<0.000000e+00> : vector<8x32xf32>
    %154 = tpu.matmul %152, %153, %cst_50 {dimension_numbers = #tpu.dot_dimension_numbers<[1], [0], [0], [1], [0, 0, 1, 1], [], []>} : vector<8x8xf32>, vector<8x32xf32>, vector<8x32xf32> -> vector<8x32xf32>
    %155 = arith.addf %134, %154 : vector<8x32xf32>
    %156 = vector.extract_strided_slice %5 {offsets = [8, 24], sizes = [8, 8], strides = [1, 1]} : vector<16x96xf32> to vector<8x8xf32>
    %157 = vector.extract_strided_slice %5 {offsets = [8, 56], sizes = [8, 8], strides = [1, 1]} : vector<16x96xf32> to vector<8x8xf32>
    %158 = vector.extract_strided_slice %5 {offsets = [8, 88], sizes = [8, 8], strides = [1, 1]} : vector<16x96xf32> to vector<8x8xf32>
    %159 = tpu.transpose %157, [1, 0] : vector<8x8xf32> -> vector<8x8xf32>
    %cst_51 = arith.constant dense<0.000000e+00> : vector<8x8xf32>
    %160 = tpu.matmul %156, %159, %cst_51 {dimension_numbers = #tpu.dot_dimension_numbers<[1], [0], [0], [1], [0, 0, 1, 1], [], []>} : vector<8x8xf32>, vector<8x8xf32>, vector<8x8xf32> -> vector<8x8xf32>
    %cst_52 = arith.constant 0.353553385 : f32
    %161 = vector.broadcast %cst_52 : f32 to vector<8x8xf32>
    %162 = arith.mulf %160, %161 : vector<8x8xf32>
    %cst_53 = arith.constant dense<0xFF800000> : vector<8xf32>
    %163 = vector.multi_reduction <maximumf>, %162, %cst_53 [1] : vector<8x8xf32> to vector<8xf32>
    %164 = vector.shape_cast %163 : vector<8xf32> to vector<8x1xf32>
    %165 = vector.broadcast %164 : vector<8x1xf32> to vector<8x8xf32>
    %166 = arith.subf %162, %165 : vector<8x8xf32>
    %167 = math.exp %166 : vector<8x8xf32>
    %cst_54 = arith.constant dense<0.000000e+00> : vector<8xf32>
    %168 = vector.multi_reduction <add>, %167, %cst_54 [1] : vector<8x8xf32> to vector<8xf32>
    %169 = vector.shape_cast %168 : vector<8xf32> to vector<8x1xf32>
    %170 = tpu.reciprocal %169 {approx = true} : vector<8x1xf32> -> vector<8x1xf32>
    %171 = vector.broadcast %170 : vector<8x1xf32> to vector<8x8xf32>
    %172 = arith.mulf %167, %171 : vector<8x8xf32>
    %cst_55 = arith.constant dense<0.000000e+00> : vector<8x8xf32>
    %173 = tpu.matmul %172, %158, %cst_55 {dimension_numbers = #tpu.dot_dimension_numbers<[1], [0], [0], [1], [0, 0, 1, 1], [], []>} : vector<8x8xf32>, vector<8x8xf32>, vector<8x8xf32> -> vector<8x8xf32>
    %174 = vector.extract_strided_slice %6 {offsets = [24, 0], sizes = [8, 32], strides = [1, 1]} : vector<32x32xf32> to vector<8x32xf32>
    %cst_56 = arith.constant dense<0.000000e+00> : vector<8x32xf32>
    %175 = tpu.matmul %173, %174, %cst_56 {dimension_numbers = #tpu.dot_dimension_numbers<[1], [0], [0], [1], [0, 0, 1, 1], [], []>} : vector<8x8xf32>, vector<8x32xf32>, vector<8x32xf32> -> vector<8x32xf32>
    %176 = arith.addf %155, %175 : vector<8x32xf32>
    %177 = tpu.concatenate %91, %176 in 0 : vector<8x32xf32>, vector<8x32xf32> -> vector<16x32xf32>
    %c0_57 = arith.constant 0 : index
    %c0_58 = arith.constant 0 : index
    %178 = vector.load %arg7[%c0_57, %c0_58] : memref<6x32xf32, #tpu.memory_space<vmem>>, vector<1x32xf32>
    %179 = vector.broadcast %178 : vector<1x32xf32> to vector<16x32xf32>
    %180 = arith.addf %177, %179 : vector<16x32xf32>
    %181 = arith.addf %0, %180 : vector<16x32xf32>
    %c1 = arith.constant 1 : index
    %c0_59 = arith.constant 0 : index
    %182 = vector.load %arg7[%c1, %c0_59] : memref<6x32xf32, #tpu.memory_space<vmem>>, vector<1x32xf32>
    %c2 = arith.constant 2 : index
    %c0_60 = arith.constant 0 : index
    %183 = vector.load %arg7[%c2, %c0_60] : memref<6x32xf32, #tpu.memory_space<vmem>>, vector<1x32xf32>
    %cst_61 = arith.constant dense<0.000000e+00> : vector<16xf32>
    %184 = vector.multi_reduction <add>, %181, %cst_61 [1] : vector<16x32xf32> to vector<16xf32>
    %185 = vector.shape_cast %184 : vector<16xf32> to vector<16x1xf32>
    %cst_62 = arith.constant 3.200000e+01 : f32
    %186 = vector.broadcast %cst_62 : f32 to vector<16x1xf32>
    %187 = arith.divf %185, %186 : vector<16x1xf32>
    %188 = vector.broadcast %187 : vector<16x1xf32> to vector<16x32xf32>
    %189 = arith.subf %181, %188 : vector<16x32xf32>
    %190 = arith.mulf %189, %189 : vector<16x32xf32>
    %cst_63 = arith.constant dense<0.000000e+00> : vector<16xf32>
    %191 = vector.multi_reduction <add>, %190, %cst_63 [1] : vector<16x32xf32> to vector<16xf32>
    %192 = vector.shape_cast %191 : vector<16xf32> to vector<16x1xf32>
    %cst_64 = arith.constant 3.200000e+01 : f32
    %193 = vector.broadcast %cst_64 : f32 to vector<16x1xf32>
    %194 = arith.divf %192, %193 : vector<16x1xf32>
    %cst_65 = arith.constant 9.99999974E-6 : f32
    %195 = vector.broadcast %cst_65 : f32 to vector<16x1xf32>
    %196 = arith.addf %194, %195 : vector<16x1xf32>
    %197 = math.rsqrt %196 : vector<16x1xf32>
    %198 = vector.broadcast %187 : vector<16x1xf32> to vector<16x32xf32>
    %199 = arith.subf %181, %198 : vector<16x32xf32>
    %200 = vector.broadcast %197 : vector<16x1xf32> to vector<16x32xf32>
    %201 = arith.mulf %199, %200 : vector<16x32xf32>
    %202 = vector.broadcast %182 : vector<1x32xf32> to vector<16x32xf32>
    %203 = arith.mulf %201, %202 : vector<16x32xf32>
    %204 = vector.broadcast %183 : vector<1x32xf32> to vector<16x32xf32>
    %205 = arith.addf %203, %204 : vector<16x32xf32>
    %c0_66 = arith.constant 0 : index
    %c0_67 = arith.constant 0 : index
    %206 = vector.load %arg4[%c0_66, %c0_67] : memref<32x64xf32, #tpu.memory_space<vmem>>, vector<32x64xf32>
    %cst_68 = arith.constant dense<0.000000e+00> : vector<16x64xf32>
    %207 = tpu.matmul %205, %206, %cst_68 {dimension_numbers = #tpu.dot_dimension_numbers<[1], [0], [0], [1], [0, 0, 1, 1], [], []>} : vector<16x32xf32>, vector<32x64xf32>, vector<16x64xf32> -> vector<16x64xf32>
    %c0_69 = arith.constant 0 : index
    %c0_70 = arith.constant 0 : index
    %208 = vector.load %arg5[%c0_69, %c0_70] : memref<1x64xf32, #tpu.memory_space<vmem>>, vector<1x64xf32>
    %209 = vector.broadcast %208 : vector<1x64xf32> to vector<16x64xf32>
    %210 = arith.addf %207, %209 : vector<16x64xf32>
    %cst_71 = arith.constant 0.000000e+00 : f32
    %211 = vector.broadcast %cst_71 : f32 to vector<16x64xf32>
    %212 = arith.maximumf %210, %211 : vector<16x64xf32>
    %c0_72 = arith.constant 0 : index
    %c0_73 = arith.constant 0 : index
    %213 = vector.load %arg6[%c0_72, %c0_73] : memref<64x32xf32, #tpu.memory_space<vmem>>, vector<64x32xf32>
    %cst_74 = arith.constant dense<0.000000e+00> : vector<16x32xf32>
    %214 = tpu.matmul %212, %213, %cst_74 {dimension_numbers = #tpu.dot_dimension_numbers<[1], [0], [0], [1], [0, 0, 1, 1], [], []>} : vector<16x64xf32>, vector<64x32xf32>, vector<16x32xf32> -> vector<16x32xf32>
    %c3 = arith.constant 3 : index
    %c0_75 = arith.constant 0 : index
    %215 = vector.load %arg7[%c3, %c0_75] : memref<6x32xf32, #tpu.memory_space<vmem>>, vector<1x32xf32>
    %216 = vector.broadcast %215 : vector<1x32xf32> to vector<16x32xf32>
    %217 = arith.addf %214, %216 : vector<16x32xf32>
    %218 = arith.addf %205, %217 : vector<16x32xf32>
    %c4 = arith.constant 4 : index
    %c0_76 = arith.constant 0 : index
    %219 = vector.load %arg7[%c4, %c0_76] : memref<6x32xf32, #tpu.memory_space<vmem>>, vector<1x32xf32>
    %c5 = arith.constant 5 : index
    %c0_77 = arith.constant 0 : index
    %220 = vector.load %arg7[%c5, %c0_77] : memref<6x32xf32, #tpu.memory_space<vmem>>, vector<1x32xf32>
    %cst_78 = arith.constant dense<0.000000e+00> : vector<16xf32>
    %221 = vector.multi_reduction <add>, %218, %cst_78 [1] : vector<16x32xf32> to vector<16xf32>
    %222 = vector.shape_cast %221 : vector<16xf32> to vector<16x1xf32>
    %cst_79 = arith.constant 3.200000e+01 : f32
    %223 = vector.broadcast %cst_79 : f32 to vector<16x1xf32>
    %224 = arith.divf %222, %223 : vector<16x1xf32>
    %225 = vector.broadcast %224 : vector<16x1xf32> to vector<16x32xf32>
    %226 = arith.subf %218, %225 : vector<16x32xf32>
    %227 = arith.mulf %226, %226 : vector<16x32xf32>
    %cst_80 = arith.constant dense<0.000000e+00> : vector<16xf32>
    %228 = vector.multi_reduction <add>, %227, %cst_80 [1] : vector<16x32xf32> to vector<16xf32>
    %229 = vector.shape_cast %228 : vector<16xf32> to vector<16x1xf32>
    %cst_81 = arith.constant 3.200000e+01 : f32
    %230 = vector.broadcast %cst_81 : f32 to vector<16x1xf32>
    %231 = arith.divf %229, %230 : vector<16x1xf32>
    %cst_82 = arith.constant 9.99999974E-6 : f32
    %232 = vector.broadcast %cst_82 : f32 to vector<16x1xf32>
    %233 = arith.addf %231, %232 : vector<16x1xf32>
    %234 = math.rsqrt %233 : vector<16x1xf32>
    %235 = vector.broadcast %224 : vector<16x1xf32> to vector<16x32xf32>
    %236 = arith.subf %218, %235 : vector<16x32xf32>
    %237 = vector.broadcast %234 : vector<16x1xf32> to vector<16x32xf32>
    %238 = arith.mulf %236, %237 : vector<16x32xf32>
    %239 = vector.broadcast %219 : vector<1x32xf32> to vector<16x32xf32>
    %240 = arith.mulf %238, %239 : vector<16x32xf32>
    %241 = vector.broadcast %220 : vector<1x32xf32> to vector<16x32xf32>
    %242 = arith.addf %240, %241 : vector<16x32xf32>
    %c0_83 = arith.constant 0 : index
    %c0_84 = arith.constant 0 : index
    %243 = vector.load %arg8[%c0_83, %c0_84] : memref<16x32xf32, #tpu.memory_space<vmem>>, vector<16x32xf32>
    tpu.vector_store %arg8[%c0_83, %c0_84], %242 {strides = array<i32>} : memref<16x32xf32, #tpu.memory_space<vmem>>, vector<16x32xf32>,
    return
  }
}

</mosaic_0001>

<bundles_post_ra>
// kernel: transformer_encoder.2
= control target key start
LH: loop header
LB: loop body
LE: loop exit
PB: predicated region body
PF: predicated region fallthrough
CT: control target
= control target key end

     0   :  { %vm42_vm0 = vcmask 261120   ;;  %v2692_v8 = vmov 0.0   ;;  %vm2693_vm1 = vmmov 0   ;;  %s2695_s18 = smov 96   ;;  %s2696_s19 = smov 88   ;;  %vm131_vm2 = vcmask 64512   ;;  %s3060_s1 = inlined_call_operand.vmem [shape: f32[32,96], index: 1, kind: input, shape index: {}]   ;;  %s3061_s0 = inlined_call_operand.vmem [shape: f32[16,32], index: 0, kind: input, shape index: {}]   ;;  %s3062_s2 = inlined_call_operand.vmem [shape: f32[1,96], index: 2, kind: input, shape index: {}]   ;;  %s3063_s3 = inlined_call_operand.vmem [shape: f32[32,32], index: 3, kind: input, shape index: {}]   ;;  %s3064_s7 = inlined_call_operand.vmem [shape: f32[6,32], index: 7, kind: input, shape index: {}]   ;;  %s3065_s4 = inlined_call_operand.vmem [shape: f32[32,64], index: 4, kind: input, shape index: {}]   ;;  %s3066_s6 = inlined_call_operand.vmem [shape: f32[64,32], index: 6, kind: input, shape index: {}]   ;;  %s3067_s5 = inlined_call_operand.vmem [shape: f32[1,64], index: 5, kind: input, shape index: {}]   ;;  %s3068_s8 = inlined_call_operand.vmem [shape: f32[16,32], index: 8, kind: output, shape index: {}]  }
   0x1   :  { %v31_v0 = vld [vmem:[%s3060_s1] sm:$0xff]  ;;  %v32_v1 = vld [vmem:[%s3060_s1 + $0x8] sm:$0xff]  ;;  %v33_v2 = vld [vmem:[%s3060_s1 + $0x10] sm:$0xff]  ;;  %2462 = vmatprep.subr.mxu1 %v2692_v8  ;;  %2464 = vmatprep.mubr.msk.f32.mxu1 %vm2693_vm1, %v2692_v8  ;;  %s2698_s20 = smov 64   ;;  %s2699_s21 = smov 80   ;;  %vm2200_vm3 = vcmask 523264  }
   0x2   :  { %v2607_v3 = vpack.c.bf16 %v32_v1, %v31_v0  ;;  %v34_v4 = vld [vmem:[%s3060_s1 + $0x18] sm:$0xff]  ;;  %v2765_v5 = vld [vmem:[%s3061_s0] sm:$0xff]  ;;  %v2772_v7 = vld [vmem:[%s3061_s0 + $0x8] sm:$0xff]  ;;  %s2694_s0 = smov 120   ;;  %s2700_s22 = smov 112  }
   0x3   :  { %v2611_v6 = vpack.c.bf16 %v34_v4, %v33_v2  ;;  %2454 = vmatprep.mubr.msk.f32.mxu0 %vm42_vm0, %v2765_v5  ;;  %v2330_v9 = vld [vmem:[%s3062_s2] ss:$0 sm:$0xff]  ;;  %s2697_s2 = smov 56   ;;  %v2821_v35 = vld [vmem:[%s3063_s3 + $0x8] sm:$0xff]  ;;  %s2701_s27 = smov 72  }
   0x4   :  { %2608 = vmatprep.subr.bf16.mxu0 %v2607_v3  ;;  %v2836_v44 = vld [vmem:[%s3063_s3] sm:$0xff]  ;;  %s2702_s28 = smov 104   ;;  %s2703_s29 = smov 48  }
   0x5   :  { %2610 = vmatpush3.bf16.msra.mxu0 %v2607_v3  ;;  %s2704_s10 = smov 40  }
   0x6   :  { %2612 = vmatprep.subr.bf16.mxu0 %v2611_v6 }
   0x9   :  { %2614 = vmatpush3.bf16.msra.mxu0 %v2611_v6 }
   0xa   :  { %2457 = vmatprep.subr.mxu0 %v2692_v8 }
   0xc   :  { %2455 = vmatmul.mubr.msk.f32.vlgmr.msra.gmra.mrb[0].mxu0 %vm42_vm0, %v2772_v7 }
   0xd   :  { %2459 = vmatprep.mubr.msk.f32.mxu0 %vm2693_vm1, %v2692_v8 }
  0xdf   :  { %v2456_v10 = vpop.f32.mrb[0].mxu0 }
  0xe0   :  { %v2785_v11 = vadd.f32 %v2456_v10, %v2330_v9  ;;  %v115_v12 = vpop.f32.mrb[1].mxu0  ;;  %v2875_v10 = vld [vmem:[%s3063_s3 + $0x10] sm:$0xff] }
  0xe1   :  { %v2787_v13 = vadd.f32 %v2330_v9, %v115_v12 }
  0xe3   :  { %294 = vrot.lane.b32.xlu1 %v2787_v13, %s2694_s0  ;;  %129 = vrot.lane.b32.xlu0 %v2787_v13, %s2695_s18 }
  0xe7   :  { %296 = vrot.lane.b32.xlu0 %v2787_v13, %s2696_s19 }
 0x155   :  { %v130_v14 = vpop.permute.xlu0 %129  ;;  %v295_v16 = vpop.permute.xlu1 %294 }
 0x156   :  { %2458 = vmatpush3.xpose.msk.msra.mxu0 %vm131_vm2, %v130_v14 }
 0x157   :  { %2467 = vmatprep.subr.mxu0 %v2692_v8 }
 0x159   :  { %2460 = vmatmul.mubr.msk.f32.vlgmr.msra.gmra.mrb[2].mxu0 %vm131_vm2, %v2787_v13  ;;  %v297_v15 = vpop.permute.xlu0 %296 }
 0x15a   :  { %2468 = vmatpush3.xpose.msk.msra.mxu0 %vm131_vm2, %v297_v15  ;;  %2469 = vmatprep.mubr.msk.f32.mxu0 %vm2693_vm1, %v2692_v8 }
 0x15b   :  { %2477 = vmatprep.subr.mxu0 %v2692_v8 }
 0x15d   :  { %2470 = vmatmul.mubr.msk.f32.vlgmr.msra.gmra.mrb[4].mxu0 %vm131_vm2, %v295_v16 }
 0x15e   :  { %2479 = vmatprep.mubr.msk.f32.mxu0 %vm2693_vm1, %v2692_v8  ;;  %2478 = vmatpush3.msra.mxu0 %v2821_v35 }
 0x15f   :  { %2487 = vmatprep.subr.mxu0 %v2692_v8 }
 0x22c   :  { %v202_v17 = vpop.f32.mrb[2].mxu0 }
 0x22d   :  { %v206_v18 = vmul.f32 0.35355338, %v202_v17  ;;  %v2461_v19 = vpop.f32.mrb[3].mxu0 }
 0x22f   :  { %v207_v20 = vsel %vm131_vm2, %v206_v18, -inf }
 0x230   :  { %208 = vmax.xlane.f32.xlu1 %v207_v20  ;;  %v368_v21 = vpop.f32.mrb[4].mxu0 }
 0x231   :  { %v372_v22 = vmul.f32 0.35355338, %v368_v21  ;;  %v2471_v23 = vpop.f32.mrb[5].mxu0 }
 0x233   :  { %v373_v24 = vsel %vm131_vm2, %v372_v22, -inf }
 0x234   :  { %374 = vmax.xlane.f32.xlu0 %v373_v24 }
 0x2bd   :  { %v209_v25 = vpop.xlane.xlu1 %208 }
 0x2be   :  { %v210_v26 = vsub.f32 %v206_v18, %v209_v25 }
 0x2c0   :  { %v211_v27 = vmul.f32 1.442695, %v210_v26 }
 0x2c1   :  { %v375_v28 = vpop.xlane.xlu0 %374 }
 0x2c2   :  { %2652 = vpow2.f32 %v211_v27  ;;  %v376_v29 = vsub.f32 %v372_v22, %v375_v28 }
 0x2c4   :  { %v377_v30 = vmul.f32 1.442695, %v376_v29 }
 0x2c6   :  { %2654 = vpow2.f32 %v377_v30 }
 0x2cc   :  { %v2653_v31 = vpop.eup %2652 }
 0x2cd   :  { %v213_v32 = vsel %vm131_vm2, %v2653_v31, 0.0 }
 0x2ce   :  { %214 = vadd.xlane.f32.xlu0 %v213_v32 }
 0x2d0   :  { %v2655_v33 = vpop.eup %2654 }
 0x2d1   :  { %v379_v34 = vsel %vm131_vm2, %v2655_v33, 0.0 }
 0x2d2   :  { %380 = vadd.xlane.f32.xlu1 %v379_v34 }
 0x2e3   :  { %384 = vrot.lane.b32.xlu1 %v2787_v13, %s2697_s2 }
 0x2e4   :  { %218 = vrot.lane.b32.xlu0 %v2787_v13, %s2698_s20 }
 0x2e7   :  { %608 = vrot.lane.b32.xlu1 %v2787_v13, %s2699_s21 }
 0x2e8   :  { %606 = vrot.lane.b32.xlu0 %v2787_v13, %s2700_s22 }
 0x35b   :  { %v215_v36 = vpop.xlane.xlu0 %214 }
 0x35c   :  { %2656 = vrcp.f32 %v215_v36 }
 0x35f   :  { %v381_v37 = vpop.xlane.xlu1 %380  ;;  %v219_v38 = vpop.permute.xlu0 %218 }
 0x360   :  { %2658 = vrcp.f32 %v381_v37  ;;  %2463 = vmatpush3.msra.mxu1 %v219_v38 }
 0x361   :  { %2472 = vmatprep.subr.mxu1 %v2692_v8 }
 0x363   :  { %v385_v41 = vpop.permute.xlu1 %384  ;;  %v607_v50 = vpop.permute.xlu0 %606 }
 0x366   :  { %v2657_v39 = vpop.eup %2656 }
 0x367   :  { %v217_v40 = vmul.f32 %v2657_v39, %v2653_v31  ;;  %v609_v48 = vpop.permute.xlu1 %608 }
 0x369   :  { %2465 = vmatmul.mubr.msk.f32.vlgmr.msra.gmra.mrb[0].mxu1 %vm131_vm2, %v217_v40 }
 0x36a   :  { %v2659_v42 = vpop.eup %2658  ;;  %2473 = vmatpush3.msra.mxu1 %v385_v41  ;;  %2474 = vmatprep.mubr.msk.f32.mxu1 %vm2693_vm1, %v2692_v8 }
 0x36b   :  { %v383_v43 = vmul.f32 %v2659_v42, %v2655_v33  ;;  %2482 = vmatprep.subr.mxu1 %v2692_v8  ;;  %v2911_v33 = vld [vmem:[%s3063_s3 + $0x18] sm:$0xff] }
 0x36d   :  { %2475 = vmatmul.mubr.msk.f32.vlgmr.msra.gmra.mrb[2].mxu1 %vm131_vm2, %v383_v43 }
 0x36e   :  { %2484 = vmatprep.mubr.msk.f32.mxu1 %vm2693_vm1, %v2692_v8  ;;  %2483 = vmatpush3.msra.mxu1 %v2836_v44 }
 0x36f   :  { %2492 = vmatprep.subr.mxu1 %v2692_v8 }
 0x43c   :  { %v290_v45 = vpop.f32.mrb[0].mxu1 }
 0x43d   :  { %v2466_v46 = vpop.f32.mrb[1].mxu1  ;;  %2485 = vmatmul.mubr.msk.f32.vlgmr.msra.gmra.mrb[4].mxu1 %vm131_vm2, %v290_v45 }
 0x43e   :  { %2494 = vmatprep.mubr.msk.f32.mxu1 %vm2693_vm1, %v2692_v8 }
 0x440   :  { %v456_v47 = vpop.f32.mrb[2].mxu1 }
 0x441   :  { %v2476_v49 = vpop.f32.mrb[3].mxu1  ;;  %2480 = vmatmul.mubr.msk.f32.vlgmr.msra.gmra.mrb[6].mxu0 %vm131_vm2, %v456_v47 }
 0x442   :  { %2488 = vmatpush3.xpose.msk.msra.mxu0 %vm131_vm2, %v609_v48  ;;  %2489 = vmatprep.mubr.msk.f32.mxu0 %vm2693_vm1, %v2692_v8 }
 0x443   :  { %2497 = vmatprep.subr.mxu0 %v2692_v8 }
 0x445   :  { %2490 = vmatmul.mubr.msk.f32.vlgmr.msra.gmra.mrb[8].mxu0 %vm131_vm2, %v607_v50 }
 0x446   :  { %2499 = vmatprep.mubr.msk.f32.mxu0 %vm2693_vm1, %v2692_v8  ;;  %2498 = vmatpush3.msra.mxu0 %v2875_v10 }
 0x447   :  { %2507 = vmatprep.subr.mxu0 %v2692_v8 }
 0x510   :  { %v602_v51 = vpop.f32.mrb[4].mxu1 }
 0x511   :  { %v2486_v52 = vpop.f32.mrb[5].mxu1 }
 0x514   :  { %v529_v53 = vpop.f32.mrb[6].mxu0 }
 0x515   :  { %v2851_v54 = vadd.f32 %v602_v51, %v529_v53  ;;  %v2481_v55 = vpop.f32.mrb[7].mxu0 }
 0x518   :  { %v680_v56 = vpop.f32.mrb[8].mxu0 }
 0x519   :  { %v684_v57 = vmul.f32 0.35355338, %v680_v56  ;;  %v2491_v58 = vpop.f32.mrb[9].mxu0 }
 0x51b   :  { %v685_v59 = vsel %vm131_vm2, %v684_v57, -inf }
 0x51c   :  { %686 = vmax.xlane.f32.xlu1 %v685_v59 }
 0x52d   :  { %848 = vrot.lane.b32.xlu1 %v2787_v13, %s2701_s27 }
 0x531   :  { %846 = vrot.lane.b32.xlu1 %v2787_v13, %s2702_s28 }
 0x535   :  { %1087 = vrot.lane.b32.xlu1 %v2785_v11, %s2695_s18 }
 0x5a9   :  { %v687_v60 = vpop.xlane.xlu1 %686 }
 0x5aa   :  { %v688_v61 = vsub.f32 %v684_v57, %v687_v60 }
 0x5ac   :  { %v689_v62 = vmul.f32 1.442695, %v688_v61 }
 0x5ad   :  { %v849_v4 = vpop.permute.xlu1 %848 }
 0x5ae   :  { %2660 = vpow2.f32 %v689_v62 }
 0x5b1   :  { %v847_v9 = vpop.permute.xlu1 %846 }
 0x5b5   :  { %v1088_v27 = vpop.permute.xlu1 %1087 }
 0x5b8   :  { %v2661_v63 = vpop.eup %2660 }
 0x5b9   :  { %v691_v0 = vsel %vm131_vm2, %v2661_v63, 0.0 }
 0x5ba   :  { %692 = vadd.xlane.f32.xlu0 %v691_v0 }
 0x5d0   :  { %696 = vrot.lane.b32.xlu0 %v2787_v13, %s2703_s29 }
 0x647   :  { %v693_v1 = vpop.xlane.xlu0 %692 }
 0x648   :  { %2662 = vrcp.f32 %v693_v1 }
 0x64b   :  { %v697_v2 = vpop.permute.xlu0 %696 }
 0x64c   :  { %2493 = vmatpush3.msra.mxu1 %v697_v2 }
 0x64d   :  { %2502 = vmatprep.subr.mxu1 %v2692_v8 }
 0x652   :  { %v2663_v3 = vpop.eup %2662 }
 0x653   :  { %v695_v6 = vmul.f32 %v2663_v3, %v2661_v63 }
 0x655   :  { %2495 = vmatmul.mubr.msk.f32.vlgmr.msra.gmra.mrb[6].mxu1 %vm131_vm2, %v695_v6 }
 0x656   :  { %2503 = vmatpush3.xpose.msk.msra.mxu1 %vm131_vm2, %v849_v4  ;;  %2504 = vmatprep.mubr.msk.f32.mxu1 %vm2693_vm1, %v2692_v8 }
 0x657   :  { %2512 = vmatprep.subr.mxu1 %v2692_v8 }
 0x659   :  { %2505 = vmatmul.mubr.msk.f32.vlgmr.msra.gmra.mrb[8].mxu1 %vm131_vm2, %v847_v9 }
 0x65a   :  { %2514 = vmatprep.mubr.msk.f32.mxu1 %vm2693_vm1, %v2692_v8  ;;  %2513 = vmatpush3.msra.mxu1 %v2911_v33 }
 0x65b   :  { %2522 = vmatprep.subr.mxu1 %v2692_v8 }
 0x728   :  { %v768_v12 = vpop.f32.mrb[6].mxu1 }
 0x729   :  { %v2496_v14 = vpop.f32.mrb[7].mxu1  ;;  %2500 = vmatmul.mubr.msk.f32.vlgmr.msra.gmra.mrb[10].mxu0 %vm131_vm2, %v768_v12 }
 0x72a   :  { %2509 = vmatprep.mubr.msk.f32.mxu0 %vm2693_vm1, %v2692_v8 }
 0x72c   :  { %v920_v15 = vpop.f32.mrb[8].mxu1 }
 0x72d   :  { %v924_v16 = vmul.f32 0.35355338, %v920_v15  ;;  %v2506_v17 = vpop.f32.mrb[9].mxu1 }
 0x72f   :  { %v925_v18 = vsel %vm131_vm2, %v924_v16, -inf }
 0x730   :  { %926 = vmax.xlane.f32.xlu0 %v925_v18 }
 0x746   :  { %936 = vrot.lane.b32.xlu0 %v2787_v13, %s2704_s10 }
 0x74a   :  { %1253 = vrot.lane.b32.xlu0 %v2785_v11, %s2696_s19 }
 0x7bd   :  { %v927_v19 = vpop.xlane.xlu0 %926 }
 0x7be   :  { %v928_v20 = vsub.f32 %v924_v16, %v927_v19 }
 0x7c0   :  { %v929_v21 = vmul.f32 1.442695, %v928_v20 }
 0x7c1   :  { %v937_v22 = vpop.permute.xlu0 %936 }
 0x7c2   :  { %2664 = vpow2.f32 %v929_v21  ;;  %2508 = vmatpush3.msra.mxu0 %v937_v22 }
 0x7c3   :  { %2517 = vmatprep.subr.mxu0 %v2692_v8 }
 0x7c5   :  { %v1254_v31 = vpop.permute.xlu0 %1253 }
 0x7cc   :  { %v2665_v23 = vpop.eup %2664 }
 0x7cd   :  { %v931_v24 = vsel %vm131_vm2, %v2665_v23, 0.0 }
 0x7ce   :  { %932 = vadd.xlane.f32.xlu1 %v931_v24 }
 0x7df   :  { %1251 = vrot.lane.b32.xlu1 %v2785_v11, %s2694_s0 }
 0x7fc   :  { %v841_v25 = vpop.f32.mrb[10].mxu0 }
 0x7fd   :  { %v845_v13 = vadd.f32 %v841_v25, %v2851_v54  ;;  %v2501_v26 = vpop.f32.mrb[11].mxu0 }
 0x85b   :  { %v933_v28 = vpop.xlane.xlu1 %932 }
 0x85c   :  { %2666 = vrcp.f32 %v933_v28 }
 0x85f   :  { %v1252_v32 = vpop.permute.xlu1 %1251 }
 0x866   :  { %v2667_v29 = vpop.eup %2666 }
 0x867   :  { %v935_v30 = vmul.f32 %v2667_v29, %v2665_v23 }
 0x869   :  { %2510 = vmatmul.mubr.msk.f32.vlgmr.msra.gmra.mrb[12].mxu0 %vm131_vm2, %v935_v30 }
 0x86a   :  { %2518 = vmatpush3.xpose.msk.msra.mxu0 %vm131_vm2, %v1088_v27  ;;  %2519 = vmatprep.mubr.msk.f32.mxu0 %vm2693_vm1, %v2692_v8 }
 0x86b   :  { %2527 = vmatprep.subr.mxu0 %v2692_v8 }
 0x86d   :  { %2520 = vmatmul.mubr.msk.f32.vlgmr.msra.gmra.mrb[14].mxu0 %vm131_vm2, %v2785_v11 }
 0x86e   :  { %2528 = vmatpush3.xpose.msk.msra.mxu0 %vm131_vm2, %v1254_v31  ;;  %2529 = vmatprep.mubr.msk.f32.mxu0 %vm2693_vm1, %v2692_v8  ;;  %v2365_v31 = vld [vmem:[%s3064_s7] ss:$0 sm:$0xff] }
 0x86f   :  { %2537 = vmatprep.subr.mxu0 %v2692_v8 }
 0x871   :  { %2530 = vmatmul.mubr.msk.f32.vlgmr.msra.gmra.mrb[16].mxu0 %vm131_vm2, %v1252_v32 }
 0x872   :  { %2538 = vmatpush3.msra.mxu0 %v2821_v35  ;;  %2539 = vmatprep.mubr.msk.f32.mxu0 %vm2693_vm1, %v2692_v8 }
 0x873   :  { %2547 = vmatprep.subr.mxu0 %v2692_v8 }
 0x93c   :  { %v1008_v34 = vpop.f32.mrb[12].mxu0 }
 0x93d   :  { %v2511_v36 = vpop.f32.mrb[13].mxu0  ;;  %2515 = vmatmul.mubr.msk.f32.vlgmr.msra.gmra.mrb[10].mxu1 %vm131_vm2, %v1008_v34 }
 0x93e   :  { %2524 = vmatprep.mubr.msk.f32.mxu1 %vm2693_vm1, %v2692_v8 }
 0x940   :  { %v1159_v35 = vpop.f32.mrb[14].mxu0 }
 0x941   :  { %v1163_v37 = vmul.f32 0.35355338, %v1159_v35  ;;  %v2521_v38 = vpop.f32.mrb[15].mxu0 }
 0x943   :  { %v1164_v39 = vsel %vm131_vm2, %v1163_v37, -inf }
 0x944   :  { %1165 = vmax.xlane.f32.xlu0 %v1164_v39  ;;  %v1325_v40 = vpop.f32.mrb[16].mxu0 }
 0x945   :  { %v1329_v41 = vmul.f32 0.35355338, %v1325_v40  ;;  %v2531_v42 = vpop.f32.mrb[17].mxu0 }
 0x947   :  { %v1330_v43 = vsel %vm131_vm2, %v1329_v41, -inf }
 0x948   :  { %1331 = vmax.xlane.f32.xlu1 %v1330_v43 }
 0x959   :  { %1175 = vrot.lane.b32.xlu1 %v2785_v11, %s2698_s20 }
 0x95d   :  { %1565 = vrot.lane.b32.xlu1 %v2785_v11, %s2699_s21 }
 0x961   :  { %1563 = vrot.lane.b32.xlu1 %v2785_v11, %s2700_s22 }
 0x9d1   :  { %v1166_v45 = vpop.xlane.xlu0 %1165 }
 0x9d2   :  { %v1167_v46 = vsub.f32 %v1163_v37, %v1166_v45 }
 0x9d4   :  { %v1168_v47 = vmul.f32 1.442695, %v1167_v46 }
 0x9d5   :  { %v1332_v48 = vpop.xlane.xlu1 %1331 }
 0x9d6   :  { %2668 = vpow2.f32 %v1168_v47  ;;  %v1333_v49 = vsub.f32 %v1329_v41, %v1332_v48 }
 0x9d8   :  { %v1334_v50 = vmul.f32 1.442695, %v1333_v49 }
 0x9d9   :  { %v1176_v51 = vpop.permute.xlu1 %1175 }
 0x9da   :  { %2670 = vpow2.f32 %v1334_v50  ;;  %2523 = vmatpush3.msra.mxu1 %v1176_v51 }
 0x9db   :  { %2532 = vmatprep.subr.mxu1 %v2692_v8 }
 0x9dd   :  { %v1566_v4 = vpop.permute.xlu1 %1565 }
 0x9e0   :  { %v2669_v52 = vpop.eup %2668 }
 0x9e1   :  { %v1170_v53 = vsel %vm131_vm2, %v2669_v52, 0.0 }
 0x9e2   :  { %1171 = vadd.xlane.f32.xlu0 %v1170_v53 }
 0x9e4   :  { %v2671_v54 = vpop.eup %2670 }
 0x9e5   :  { %v1336_v55 = vsel %vm131_vm2, %v2671_v54, 0.0 }
 0x9e6   :  { %1337 = vadd.xlane.f32.xlu0 %v1336_v55 }
 0x9fc   :  { %1341 = vrot.lane.b32.xlu0 %v2785_v11, %s2697_s2 }
 0xa10   :  { %v1081_v56 = vpop.f32.mrb[10].mxu1 }
 0xa11   :  { %v2931_v57 = vadd.f32 %v1081_v56, %v845_v13  ;;  %v2516_v58 = vpop.f32.mrb[11].mxu1 }
 0xa13   :  { %v2048_v36 = vadd.f32 %v2365_v31, %v2931_v57 }
 0xa15   :  { %v2050_v39 = vadd.f32 %v2048_v36, %v2765_v5 }
 0xa17   :  { %v2054_v40 = vsel %vm42_vm0, %v2050_v39, 0.0 }
 0xa6f   :  { %v1172_v59 = vpop.xlane.xlu0 %1171 }
 0xa70   :  { %2672 = vrcp.f32 %v1172_v59 }
 0xa73   :  { %v1338_v60 = vpop.xlane.xlu0 %1337 }
 0xa74   :  { %2674 = vrcp.f32 %v1338_v60 }
 0xa77   :  { %v1342_v63 = vpop.permute.xlu0 %1341 }
 0xa7a   :  { %v2673_v61 = vpop.eup %2672 }
 0xa7b   :  { %v1174_v62 = vmul.f32 %v2673_v61, %v2669_v52 }
 0xa7d   :  { %2525 = vmatmul.mubr.msk.f32.vlgmr.msra.gmra.mrb[12].mxu1 %vm131_vm2, %v1174_v62 }
 0xa7e   :  { %v2675_v0 = vpop.eup %2674  ;;  %2533 = vmatpush3.msra.mxu1 %v1342_v63  ;;  %2534 = vmatprep.mubr.msk.f32.mxu1 %vm2693_vm1, %v2692_v8 }
 0xa7f   :  { %v1340_v1 = vmul.f32 %v2675_v0, %v2671_v54  ;;  %2542 = vmatprep.subr.mxu1 %v2692_v8 }
 0xa81   :  { %2535 = vmatmul.mubr.msk.f32.vlgmr.msra.gmra.mrb[14].mxu1 %vm131_vm2, %v1340_v1 }
 0xa82   :  { %2543 = vmatpush3.msra.mxu1 %v2836_v44  ;;  %2544 = vmatprep.mubr.msk.f32.mxu1 %vm2693_vm1, %v2692_v8  ;;  %v1564_v44 = vpop.permute.xlu1 %1563 }
 0xa83   :  { %2552 = vmatprep.subr.mxu1 %v2692_v8 }
 0xb50   :  { %v1247_v2 = vpop.f32.mrb[12].mxu1 }
 0xb51   :  { %v2526_v3 = vpop.f32.mrb[13].mxu1  ;;  %2545 = vmatmul.mubr.msk.f32.vlgmr.msra.gmra.mrb[16].mxu1 %vm131_vm2, %v1247_v2 }
 0xb52   :  { %2554 = vmatprep.mubr.msk.f32.mxu1 %vm2693_vm1, %v2692_v8 }
 0xb54   :  { %v1413_v6 = vpop.f32.mrb[14].mxu1 }
 0xb55   :  { %v2536_v9 = vpop.f32.mrb[15].mxu1  ;;  %2540 = vmatmul.mubr.msk.f32.vlgmr.msra.gmra.mrb[18].mxu0 %vm131_vm2, %v1413_v6 }
 0xb56   :  { %2548 = vmatpush3.xpose.msk.msra.mxu0 %vm131_vm2, %v1566_v4  ;;  %2549 = vmatprep.mubr.msk.f32.mxu0 %vm2693_vm1, %v2692_v8 }
 0xb57   :  { %2557 = vmatprep.subr.mxu0 %v2692_v8 }
 0xb59   :  { %2550 = vmatmul.mubr.msk.f32.vlgmr.msra.gmra.mrb[20].mxu0 %vm131_vm2, %v1564_v44 }
 0xb5a   :  { %2558 = vmatpush3.msra.mxu0 %v2875_v10  ;;  %2559 = vmatprep.mubr.msk.f32.mxu0 %vm2693_vm1, %v2692_v8 }
 0xb5b   :  { %2567 = vmatprep.subr.mxu0 %v2692_v8 }
 0xc24   :  { %v1559_v12 = vpop.f32.mrb[16].mxu1 }
 0xc25   :  { %v2546_v14 = vpop.f32.mrb[17].mxu1 }
 0xc28   :  { %v1486_v15 = vpop.f32.mrb[18].mxu0 }
 0xc29   :  { %v1560_v16 = vadd.f32 %v1559_v12, %v1486_v15  ;;  %v2541_v17 = vpop.f32.mrb[19].mxu0  ;;  %v2367_v15 = vld [vmem:[%s3064_s7 + $0x2] ss:$0 sm:$0xff] }
 0xc2c   :  { %v1637_v18 = vpop.f32.mrb[20].mxu0 }
 0xc2d   :  { %v1641_v19 = vmul.f32 0.35355338, %v1637_v18  ;;  %v2551_v20 = vpop.f32.mrb[21].mxu0  ;;  %v2093_v18 = vld [vmem:[%s3065_s4] sm:$0xff] }
 0xc2f   :  { %v1642_v21 = vsel %vm131_vm2, %v1641_v19, -inf }
 0xc30   :  { %1643 = vmax.xlane.f32.xlu0 %v1642_v21  ;;  %v2095_v21 = vld [vmem:[%s3065_s4 + $0x10] sm:$0xff] }
 0xc46   :  { %1653 = vrot.lane.b32.xlu0 %v2785_v11, %s2703_s29 }
 0xc4a   :  { %1803 = vrot.lane.b32.xlu0 %v2785_v11, %s2702_s28 }
 0xcbd   :  { %v1644_v10 = vpop.xlane.xlu0 %1643 }
 0xcbe   :  { %v1645_v22 = vsub.f32 %v1641_v19, %v1644_v10  ;;  %v2094_v19 = vld [vmem:[%s3065_s4 + $0x8] sm:$0xff]  ;;  %v2096_v10 = vld [vmem:[%s3065_s4 + $0x18] sm:$0xff] }
 0xcbf   :  { %v2615_v20 = vpack.c.bf16 %v2094_v19, %v2093_v18 }
 0xcc0   :  { %v1646_v23 = vmul.f32 1.442695, %v1645_v22  ;;  %v2619_v22 = vpack.c.bf16 %v2096_v10, %v2095_v21 }
 0xcc1   :  { %v1654_v24 = vpop.permute.xlu0 %1653 }
 0xcc2   :  { %2676 = vpow2.f32 %v1646_v23  ;;  %2553 = vmatpush3.msra.mxu1 %v1654_v24  ;;  %v2187_v23 = vld [vmem:[%s3066_s6] sm:$0xff]  ;;  %v2188_v24 = vld [vmem:[%s3066_s6 + $0x8] sm:$0xff] }
 0xcc3   :  { %2562 = vmatprep.subr.mxu1 %v2692_v8 }
 0xcc5   :  { %v1804_v30 = vpop.permute.xlu0 %1803 }
 0xccc   :  { %v2677_v25 = vpop.eup %2676 }
 0xccd   :  { %v1648_v13 = vsel %vm131_vm2, %v2677_v25, 0.0 }
 0xcce   :  { %1649 = vadd.xlane.f32.xlu1 %v1648_v13  ;;  %v2623_v13 = vpack.c.bf16 %v2188_v24, %v2187_v23 }
 0xcdf   :  { %1805 = vrot.lane.b32.xlu1 %v2785_v11, %s2701_s27 }
 0xd5b   :  { %v1650_v26 = vpop.xlane.xlu1 %1649 }
 0xd5c   :  { %2678 = vrcp.f32 %v1650_v26  ;;  %v2190_v26 = vld [vmem:[%s3066_s6 + $0x18] sm:$0xff] }
 0xd5f   :  { %v1806_v29 = vpop.permute.xlu1 %1805 }
 0xd66   :  { %v2679_v27 = vpop.eup %2678 }
 0xd67   :  { %v1652_v28 = vmul.f32 %v2679_v27, %v2677_v25  ;;  %v2189_v25 = vld [vmem:[%s3066_s6 + $0x10] sm:$0xff] }
 0xd68   :  { %v2627_v27 = vpack.c.bf16 %v2190_v26, %v2189_v25 }
 0xd69   :  { %2555 = vmatmul.mubr.msk.f32.vlgmr.msra.gmra.mrb[18].mxu1 %vm131_vm2, %v1652_v28  ;;  %v2191_v28 = vld [vmem:[%s3066_s6 + $0x20] sm:$0xff] }
 0xd6a   :  { %2563 = vmatpush3.xpose.msk.msra.mxu1 %vm131_vm2, %v1806_v29  ;;  %2564 = vmatprep.mubr.msk.f32.mxu1 %vm2693_vm1, %v2692_v8  ;;  %v2192_v29 = vld [vmem:[%s3066_s6 + $0x28] sm:$0xff] }
 0xd6b   :  { %2572 = vmatprep.subr.mxu1 %v2692_v8 }
 0xd6d   :  { %2565 = vmatmul.mubr.msk.f32.vlgmr.msra.gmra.mrb[20].mxu1 %vm131_vm2, %v1804_v30  ;;  %v2631_v30 = vpack.c.bf16 %v2192_v29, %v2191_v28 }
 0xd6e   :  { %2573 = vmatpush3.msra.mxu1 %v2911_v33  ;;  %2574 = vmatprep.mubr.msk.f32.mxu1 %vm2693_vm1, %v2692_v8 }
 0xd6f   :  { %2624 = vmatprep.subr.bf16.mxu1 %v2623_v13 }
 0xe3c   :  { %v1725_v32 = vpop.f32.mrb[18].mxu1 }
 0xe3d   :  { %v2556_v34 = vpop.f32.mrb[19].mxu1  ;;  %2560 = vmatmul.mubr.msk.f32.vlgmr.msra.gmra.mrb[22].mxu0 %vm131_vm2, %v1725_v32 }
 0xe3e   :  { %2569 = vmatprep.mubr.msk.f32.mxu0 %vm2693_vm1, %v2692_v8 }
 0xe40   :  { %v1877_v35 = vpop.f32.mrb[20].mxu1 }
 0xe41   :  { %v1881_v37 = vmul.f32 0.35355338, %v1877_v35  ;;  %v2566_v38 = vpop.f32.mrb[21].mxu1 }
 0xe43   :  { %v1882_v33 = vsel %vm131_vm2, %v1881_v37, -inf }
 0xe44   :  { %1883 = vmax.xlane.f32.xlu1 %v1882_v33  ;;  %v2193_v33 = vld [vmem:[%s3066_s6 + $0x30] sm:$0xff] }
 0xe48   :  { %2055 = vadd.xlane.f32.xlu1 %v2054_v40 }
 0xed1   :  { %v1884_v41 = vpop.xlane.xlu1 %1883 }
 0xed2   :  { %v1885_v42 = vsub.f32 %v1881_v37, %v1884_v41  ;;  %v2368_v41 = vld [vmem:[%s3067_s5] ss:$0 sm:$0xff] }
 0xed4   :  { %v1886_v43 = vmul.f32 1.442695, %v1885_v42 }
 0xed5   :  { %v2056_v54 = vpop.xlane.xlu1 %2055 }
 0xed6   :  { %2680 = vpow2.f32 %v1886_v43  ;;  %v2061_v55 = vmul.f32 0.03125, %v2056_v54 }
 0xed8   :  { %v2063_v58 = vsub.f32 %v2050_v39, %v2061_v55  ;;  %v2194_v39 = vld [vmem:[%s3066_s6 + $0x38] sm:$0xff] }
 0xed9   :  { %v2635_v40 = vpack.c.bf16 %v2194_v39, %v2193_v33 }
 0xeda   :  { %v2065_v62 = vmul.f32 %v2063_v58, %v2063_v58 }
 0xedc   :  { %v2067_v63 = vsel %vm42_vm0, %v2065_v62, 0.0 }
 0xee0   :  { %v2681_v45 = vpop.eup %2680 }
 0xee1   :  { %v1888_v8 = vsel %vm131_vm2, %v2681_v45, 0.0 }
 0xee2   :  { %1889 = vadd.xlane.f32.xlu0 %v1888_v8 }
 0xef8   :  { %1893 = vrot.lane.b32.xlu0 %v2785_v11, %s2704_s10 }
 0xf10   :  { %v1798_v46 = vpop.f32.mrb[22].mxu0 }
 0xf11   :  { %v1802_v47 = vadd.f32 %v1798_v46, %v1560_v16  ;;  %v2561_v48 = vpop.f32.mrb[23].mxu0 }
 0xf12   :  { %v2371_v48 = vld [vmem:[%s3064_s7 + $0x3] ss:$0 sm:$0xff] }
 0xf6f   :  { %v1890_v49 = vpop.xlane.xlu0 %1889 }
 0xf70   :  { %2682 = vrcp.f32 %v1890_v49 }
 0xf73   :  { %v1894_v5 = vpop.permute.xlu0 %1893 }
 0xf74   :  { %2568 = vmatpush3.msra.mxu0 %v1894_v5 }
 0xf75   :  { %2616 = vmatprep.subr.bf16.mxu0 %v2615_v20 }
 0xf7a   :  { %v2683_v50 = vpop.eup %2682 }
 0xf7b   :  { %v1892_v51 = vmul.f32 %v2683_v50, %v2681_v45 }
 0xf7d   :  { %2570 = vmatmul.mubr.msk.f32.vlgmr.msra.gmra.mrb[24].mxu0 %vm131_vm2, %v1892_v51 }
 0xf7e   :  { %2618 = vmatpush3.bf16.msra.mxu0 %v2615_v20 }
 0xf7f   :  { %2620 = vmatprep.subr.bf16.mxu0 %v2619_v22 }
 0xf82   :  { %2622 = vmatpush3.bf16.msra.mxu0 %v2619_v22 }
0x1050   :  { %v1965_v52 = vpop.f32.mrb[24].mxu0 }
0x1051   :  { %v2571_v53 = vpop.f32.mrb[25].mxu0  ;;  %2575 = vmatmul.mubr.msk.f32.vlgmr.msra.gmra.mrb[22].mxu1 %vm131_vm2, %v1965_v52 }
0x1052   :  { %2626 = vmatpush3.bf16.msra.mxu1 %v2623_v13 }
0x1053   :  { %2628 = vmatprep.subr.bf16.mxu1 %v2627_v27 }
0x1056   :  { %2630 = vmatpush3.bf16.msra.mxu1 %v2627_v27 }
0x1057   :  { %2632 = vmatprep.subr.bf16.mxu1 %v2631_v30 }
0x105a   :  { %2634 = vmatpush3.bf16.msra.mxu1 %v2631_v30 }
0x105b   :  { %2636 = vmatprep.subr.bf16.mxu1 %v2635_v40 }
0x105e   :  { %2638 = vmatpush3.bf16.msra.mxu1 %v2635_v40 }
0x1124   :  { %v2038_v56 = vpop.f32.mrb[22].mxu1 }
0x1125   :  { %v2042_v57 = vadd.f32 %v2038_v56, %v1802_v47  ;;  %v2576_v11 = vpop.f32.mrb[23].mxu1 }
0x1127   :  { %v2049_v59 = vadd.f32 %v2365_v31, %v2042_v57 }
0x1129   :  { %v2051_v60 = vadd.f32 %v2049_v59, %v2772_v7  ;;  %v2366_v7 = vld [vmem:[%s3064_s7 + $0x1] ss:$0 sm:$0xff] }
0x112b   :  { %v2057_v61 = vsel %vm42_vm0, %v2051_v60, 0.0 }
0x112c   :  { %2058 = vadd.xlane.f32.xlu1 %v2057_v61 }
0x1130   :  { %2068 = vadd.xlane.f32.xlu1 %v2067_v63 }
0x11b9   :  { %v2059_v0 = vpop.xlane.xlu1 %2058 }
0x11ba   :  { %v2062_v1 = vmul.f32 0.03125, %v2059_v0 }
0x11bc   :  { %v2064_v2 = vsub.f32 %v2051_v60, %v2062_v1 }
0x11bd   :  { %v2069_v3 = vpop.xlane.xlu1 %2068 }
0x11be   :  { %v2073_v4 = vmul.f32 0.03125, %v2069_v3  ;;  %v2066_v6 = vmul.f32 %v2064_v2, %v2064_v2 }
0x11c0   :  { %v2075_v9 = vadd.f32 1e-05, %v2073_v4  ;;  %v2070_v44 = vsel %vm42_vm0, %v2066_v6, 0.0 }
0x11c1   :  { %2071 = vadd.xlane.f32.xlu1 %v2070_v44 }
0x11c2   :  { %2684 = vrsqrt.f32 %v2075_v9 }
0x11cc   :  { %v2685_v12 = vpop.eup %2684 }
0x11cd   :  { %v2079_v14 = vmul.f32 %v2685_v12, %v2063_v58  ;;  %v2374_v12 = vld [vmem:[%s3064_s7 + $0x4] ss:$0 sm:$0xff] }
0x11cf   :  { %v2085_v16 = vmul.f32 %v2366_v7, %v2079_v14  ;;  %v2375_v14 = vld [vmem:[%s3064_s7 + $0x5] ss:$0 sm:$0xff] }
0x11d1   :  { %v2091_v17 = vadd.f32 %v2367_v15, %v2085_v16 }
0x11d3   :  { %2585 = vmatprep.mubr.msk.f32.mxu0 %vm42_vm0, %v2091_v17 }
0x124e   :  { %v2072_v31 = vpop.xlane.xlu1 %2071 }
0x124f   :  { %v2074_v32 = vmul.f32 0.03125, %v2072_v31 }
0x1251   :  { %v2076_v34 = vadd.f32 1e-05, %v2074_v32 }
0x1253   :  { %2686 = vrsqrt.f32 %v2076_v34 }
0x125d   :  { %v2687_v36 = vpop.eup %2686 }
0x125e   :  { %v2080_v35 = vmul.f32 %v2687_v36, %v2064_v2 }
0x1260   :  { %v2086_v37 = vmul.f32 %v2366_v7, %v2080_v35 }
0x1262   :  { %v2092_v38 = vadd.f32 %v2367_v15, %v2086_v37 }
0x1264   :  { %2586 = vmatmul.mubr.msk.f32.vlgmr.msra.gmra.mrb[26].mxu0 %vm42_vm0, %v2092_v38 }
0x1337   :  { %v2587_v42 = vpop.f32.mrb[26].mxu0 }
0x1338   :  { %v2182_v43 = vadd.f32 %v2587_v42, %v2368_v41  ;;  %v2176_v45 = vpop.f32.mrb[27].mxu0 }
0x1339   :  { %v2177_v8 = vadd.f32 %v2368_v41, %v2176_v45 }
0x133a   :  { %v2186_v47 = vmax.f32 %v2182_v43, 0.0 }
0x133b   :  { %v2185_v46 = vmax.f32 %v2177_v8, 0.0 }
0x133d   :  { %2604 = vmatprep.mubr.msk.f32.mxu1 %vm2200_vm3, %v2185_v46 }
0x133e   :  { %2605 = vmatmul.mubr.msk.f32.vlgmr.msra.gmra.mrb[24].mxu1 %vm2200_vm3, %v2186_v47 }
0x1411   :  { %v2606_v49 = vpop.f32.mrb[24].mxu1 }
0x1412   :  { %v2273_v5 = vpop.f32.mrb[25].mxu1  ;;  %v2279_v50 = vadd.f32 %v2606_v49, %v2371_v48 }
0x1413   :  { %v2274_v51 = vadd.f32 %v2371_v48, %v2273_v5 }
0x1414   :  { %v2283_v54 = vadd.f32 %v2279_v50, %v2092_v38 }
0x1415   :  { %v2282_v52 = vadd.f32 %v2274_v51, %v2091_v17 }
0x1416   :  { %v2289_v55 = vsel %vm42_vm0, %v2283_v54, 0.0 }
0x1417   :  { %v2286_v53 = vsel %vm42_vm0, %v2282_v52, 0.0 }
0x1418   :  { %2287 = vadd.xlane.f32.xlu1 %v2286_v53 }
0x141c   :  { %2290 = vadd.xlane.f32.xlu1 %v2289_v55 }
0x14a5   :  { %v2288_v56 = vpop.xlane.xlu1 %2287 }
0x14a6   :  { %v2292_v57 = vmul.f32 0.03125, %v2288_v56 }
0x14a8   :  { %v2294_v11 = vsub.f32 %v2282_v52, %v2292_v57 }
0x14a9   :  { %v2291_v58 = vpop.xlane.xlu1 %2290 }
0x14aa   :  { %v2293_v59 = vmul.f32 0.03125, %v2291_v58  ;;  %v2296_v60 = vmul.f32 %v2294_v11, %v2294_v11 }
0x14ac   :  { %v2295_v61 = vsub.f32 %v2283_v54, %v2293_v59  ;;  %v2298_v62 = vsel %vm42_vm0, %v2296_v60, 0.0 }
0x14ad   :  { %2299 = vadd.xlane.f32.xlu0 %v2298_v62 }
0x14ae   :  { %v2297_v63 = vmul.f32 %v2295_v61, %v2295_v61 }
0x14b0   :  { %v2301_v0 = vsel %vm42_vm0, %v2297_v63, 0.0 }
0x14b1   :  { %2302 = vadd.xlane.f32.xlu1 %v2301_v0 }
0x153a   :  { %v2300_v1 = vpop.xlane.xlu0 %2299 }
0x153b   :  { %v2304_v2 = vmul.f32 0.03125, %v2300_v1 }
0x153d   :  { %v2306_v3 = vadd.f32 1e-05, %v2304_v2 }
0x153e   :  { %v2303_v4 = vpop.xlane.xlu1 %2302 }
0x153f   :  { %2688 = vrsqrt.f32 %v2306_v3  ;;  %v2305_v6 = vmul.f32 0.03125, %v2303_v4 }
0x1541   :  { %v2307_v9 = vadd.f32 1e-05, %v2305_v6 }
0x1543   :  { %2690 = vrsqrt.f32 %v2307_v9 }
0x1549   :  { %v2689_v44 = vpop.eup %2688 }
0x154a   :  { %v2310_v7 = vmul.f32 %v2689_v44, %v2294_v11 }
0x154c   :  { %v2316_v15 = vmul.f32 %v2374_v12, %v2310_v7 }
0x154d   :  { %v2691_v16 = vpop.eup %2690 }
0x154e   :  { %v2322_v17 = vadd.f32 %v2375_v14, %v2316_v15  ;;  %v2311_v18 = vmul.f32 %v2691_v16, %v2295_v61 }
0x1550   :  { %2324 = vst.msk [vmem:[%s3068_s8] sm:$0xff] %vm42_vm0, %v2322_v17  ;;  %v2317_v19 = vmul.f32 %v2374_v12, %v2311_v18 }
0x1552   :  { %v2323_v20 = vadd.f32 %v2375_v14, %v2317_v19 }
0x1554   :  { %2325 = vst.msk [vmem:[%s3068_s8 + $0x8] sm:$0xff] %vm42_vm0, %v2323_v20 }

// kernel: transformer_encoder.3
= control target key start
LH: loop header
LB: loop body
LE: loop exit
PB: predicated region body
PF: predicated region fallthrough
CT: control target
= control target key end

     0   :  { %vm43_vm0 = vcmask 261120   ;;  %s3109_s0 = inlined_call_operand.vmem [shape: f32[16,32], index: 0, kind: input, shape index: {}]   ;;  %s3110_s1 = inlined_call_operand.vmem [shape: f32[32,96], index: 1, kind: input, shape index: {}]   ;;  %s3111_s2 = inlined_call_operand.vmem [shape: f32[1,96], index: 2, kind: input, shape index: {}]   ;;  %s3112_s3 = inlined_call_operand.vmem [shape: f32[32,32], index: 3, kind: input, shape index: {}]   ;;  %s3113_s4 = inlined_call_operand.vmem [shape: f32[32,64], index: 4, kind: input, shape index: {}]   ;;  %s3114_s5 = inlined_call_operand.vmem [shape: f32[1,64], index: 5, kind: input, shape index: {}]   ;;  %s3115_s6 = inlined_call_operand.vmem [shape: f32[64,32], index: 6, kind: input, shape index: {}]   ;;  %s3116_s7 = inlined_call_operand.vmem [shape: f32[6,32], index: 7, kind: input, shape index: {}]   ;;  %s3117_s8 = inlined_call_operand.hbm [shape: f32[16,32], index: 8, kind: output, shape index: {}]  }
   0x1   :  { %v32_v0 = vld [vmem:[%s3110_s1] sm:$0xff]  ;;  %v33_v1 = vld [vmem:[%s3110_s1 + $0x8] sm:$0xff]  ;;  %v34_v2 = vld [vmem:[%s3110_s1 + $0x10] sm:$0xff] }
   0x2   :  { %v2620_v3 = vpack.c.bf16 %v33_v1, %v32_v0  ;;  %v35_v4 = vld [vmem:[%s3110_s1 + $0x18] sm:$0xff]  ;;  %v2808_v5 = vld [vmem:[%s3109_s0] sm:$0xff] }
   0x3   :  { %v2624_v6 = vpack.c.bf16 %v35_v4, %v34_v2  ;;  %2467 = vmatprep.mubr.msk.f32.mxu0 %vm43_vm0, %v2808_v5 }
   0x4   :  { %13 = vsyncpa [#allocation3], 0  ;;  %2621 = vmatprep.subr.bf16.mxu0 %v2620_v3  ;;  %v2815_v7 = vld [vmem:[%s3109_s0 + $0x8] sm:$0xff]  ;;  %v2732_v8 = vmov 0.0   ;;  %vm2733_vm1 = vmmov 0   ;;  %s2734_s0 = smov 120  }
   0x5   :  { %2623 = vmatpush3.bf16.msra.mxu0 %v2620_v3  ;;  %2475 = vmatprep.subr.mxu1 %v2732_v8  ;;  %v2343_v9 = vld [vmem:[%s3111_s2] ss:$0 sm:$0xff]  ;;  %s2735_s18 = smov 96   ;;  %s2736_s19 = smov 88   ;;  %vm132_vm2 = vcmask 64512   ;;  %v2864_v35 = vld [vmem:[%s3112_s3 + $0x8] sm:$0xff] }
   0x6   :  { %2625 = vmatprep.subr.bf16.mxu0 %v2624_v6  ;;  %2477 = vmatprep.mubr.msk.f32.mxu1 %vm2733_vm1, %v2732_v8  ;;  %s2737_s2 = smov 56   ;;  %s2738_s20 = smov 64   ;;  %v2879_v44 = vld [vmem:[%s3112_s3] sm:$0xff]  ;;  %vm2201_vm3 = vcmask 523264  }
   0x7   :  { %s2739_s21 = smov 80   ;;  %s2740_s22 = smov 112  }
   0x8   :  { %s2741_s27 = smov 72   ;;  %s2742_s28 = smov 104  }
   0x9   :  { %2627 = vmatpush3.bf16.msra.mxu0 %v2624_v6  ;;  %s2743_s29 = smov 48   ;;  %s2744_s10 = smov 40  }
   0xa   :  { %2470 = vmatprep.subr.mxu0 %v2732_v8 }
   0xc   :  { %2468 = vmatmul.mubr.msk.f32.vlgmr.msra.gmra.mrb[0].mxu0 %vm43_vm0, %v2815_v7 }
   0xd   :  { %2472 = vmatprep.mubr.msk.f32.mxu0 %vm2733_vm1, %v2732_v8 }
  0xdf   :  { %v2469_v10 = vpop.f32.mrb[0].mxu0 }
  0xe0   :  { %v2828_v11 = vadd.f32 %v2469_v10, %v2343_v9  ;;  %v116_v12 = vpop.f32.mrb[1].mxu0  ;;  %v2918_v10 = vld [vmem:[%s3112_s3 + $0x10] sm:$0xff] }
  0xe1   :  { %v2830_v13 = vadd.f32 %v2343_v9, %v116_v12 }
  0xe3   :  { %295 = vrot.lane.b32.xlu1 %v2830_v13, %s2734_s0  ;;  %130 = vrot.lane.b32.xlu0 %v2830_v13, %s2735_s18 }
  0xe7   :  { %297 = vrot.lane.b32.xlu0 %v2830_v13, %s2736_s19 }
 0x155   :  { %v131_v14 = vpop.permute.xlu0 %130  ;;  %v296_v16 = vpop.permute.xlu1 %295 }
 0x156   :  { %2471 = vmatpush3.xpose.msk.msra.mxu0 %vm132_vm2, %v131_v14 }
 0x157   :  { %2480 = vmatprep.subr.mxu0 %v2732_v8 }
 0x159   :  { %2473 = vmatmul.mubr.msk.f32.vlgmr.msra.gmra.mrb[2].mxu0 %vm132_vm2, %v2830_v13  ;;  %v298_v15 = vpop.permute.xlu0 %297 }
 0x15a   :  { %2481 = vmatpush3.xpose.msk.msra.mxu0 %vm132_vm2, %v298_v15  ;;  %2482 = vmatprep.mubr.msk.f32.mxu0 %vm2733_vm1, %v2732_v8 }
 0x15b   :  { %2490 = vmatprep.subr.mxu0 %v2732_v8 }
 0x15d   :  { %2483 = vmatmul.mubr.msk.f32.vlgmr.msra.gmra.mrb[4].mxu0 %vm132_vm2, %v296_v16 }
 0x15e   :  { %2492 = vmatprep.mubr.msk.f32.mxu0 %vm2733_vm1, %v2732_v8  ;;  %2491 = vmatpush3.msra.mxu0 %v2864_v35 }
 0x15f   :  { %2500 = vmatprep.subr.mxu0 %v2732_v8 }
 0x22c   :  { %v203_v17 = vpop.f32.mrb[2].mxu0 }
 0x22d   :  { %v207_v18 = vmul.f32 0.35355338, %v203_v17  ;;  %v2474_v19 = vpop.f32.mrb[3].mxu0 }
 0x22f   :  { %v208_v20 = vsel %vm132_vm2, %v207_v18, -inf }
 0x230   :  { %209 = vmax.xlane.f32.xlu1 %v208_v20  ;;  %v369_v21 = vpop.f32.mrb[4].mxu0 }
 0x231   :  { %v373_v22 = vmul.f32 0.35355338, %v369_v21  ;;  %v2484_v23 = vpop.f32.mrb[5].mxu0 }
 0x233   :  { %v374_v24 = vsel %vm132_vm2, %v373_v22, -inf }
 0x234   :  { %375 = vmax.xlane.f32.xlu0 %v374_v24 }
 0x2bd   :  { %v210_v25 = vpop.xlane.xlu1 %209 }
 0x2be   :  { %v211_v26 = vsub.f32 %v207_v18, %v210_v25 }
 0x2c0   :  { %v212_v27 = vmul.f32 1.442695, %v211_v26 }
 0x2c1   :  { %v376_v28 = vpop.xlane.xlu0 %375 }
 0x2c2   :  { %2668 = vpow2.f32 %v212_v27  ;;  %v377_v29 = vsub.f32 %v373_v22, %v376_v28 }
 0x2c4   :  { %v378_v30 = vmul.f32 1.442695, %v377_v29 }
 0x2c6   :  { %2670 = vpow2.f32 %v378_v30 }
 0x2cc   :  { %v2669_v31 = vpop.eup %2668 }
 0x2cd   :  { %v214_v32 = vsel %vm132_vm2, %v2669_v31, 0.0 }
 0x2ce   :  { %215 = vadd.xlane.f32.xlu0 %v214_v32 }
 0x2d0   :  { %v2671_v33 = vpop.eup %2670 }
 0x2d1   :  { %v380_v34 = vsel %vm132_vm2, %v2671_v33, 0.0 }
 0x2d2   :  { %381 = vadd.xlane.f32.xlu1 %v380_v34 }
 0x2e3   :  { %385 = vrot.lane.b32.xlu1 %v2830_v13, %s2737_s2 }
 0x2e4   :  { %219 = vrot.lane.b32.xlu0 %v2830_v13, %s2738_s20 }
 0x2e7   :  { %609 = vrot.lane.b32.xlu1 %v2830_v13, %s2739_s21 }
 0x2e8   :  { %607 = vrot.lane.b32.xlu0 %v2830_v13, %s2740_s22 }
 0x35b   :  { %v216_v36 = vpop.xlane.xlu0 %215 }
 0x35c   :  { %2672 = vrcp.f32 %v216_v36 }
 0x35f   :  { %v382_v37 = vpop.xlane.xlu1 %381  ;;  %v220_v38 = vpop.permute.xlu0 %219 }
 0x360   :  { %2674 = vrcp.f32 %v382_v37  ;;  %2476 = vmatpush3.msra.mxu1 %v220_v38 }
 0x361   :  { %2485 = vmatprep.subr.mxu1 %v2732_v8 }
 0x363   :  { %v386_v41 = vpop.permute.xlu1 %385  ;;  %v608_v50 = vpop.permute.xlu0 %607 }
 0x366   :  { %v2673_v39 = vpop.eup %2672 }
 0x367   :  { %v218_v40 = vmul.f32 %v2673_v39, %v2669_v31  ;;  %v610_v48 = vpop.permute.xlu1 %609 }
 0x369   :  { %2478 = vmatmul.mubr.msk.f32.vlgmr.msra.gmra.mrb[0].mxu1 %vm132_vm2, %v218_v40 }
 0x36a   :  { %v2675_v42 = vpop.eup %2674  ;;  %2486 = vmatpush3.msra.mxu1 %v386_v41  ;;  %2487 = vmatprep.mubr.msk.f32.mxu1 %vm2733_vm1, %v2732_v8 }
 0x36b   :  { %v384_v43 = vmul.f32 %v2675_v42, %v2671_v33  ;;  %2495 = vmatprep.subr.mxu1 %v2732_v8  ;;  %v2954_v33 = vld [vmem:[%s3112_s3 + $0x18] sm:$0xff] }
 0x36d   :  { %2488 = vmatmul.mubr.msk.f32.vlgmr.msra.gmra.mrb[2].mxu1 %vm132_vm2, %v384_v43 }
 0x36e   :  { %2497 = vmatprep.mubr.msk.f32.mxu1 %vm2733_vm1, %v2732_v8  ;;  %2496 = vmatpush3.msra.mxu1 %v2879_v44 }
 0x36f   :  { %2505 = vmatprep.subr.mxu1 %v2732_v8 }
 0x43c   :  { %v291_v45 = vpop.f32.mrb[0].mxu1 }
 0x43d   :  { %v2479_v46 = vpop.f32.mrb[1].mxu1  ;;  %2498 = vmatmul.mubr.msk.f32.vlgmr.msra.gmra.mrb[4].mxu1 %vm132_vm2, %v291_v45 }
 0x43e   :  { %2507 = vmatprep.mubr.msk.f32.mxu1 %vm2733_vm1, %v2732_v8 }
 0x440   :  { %v457_v47 = vpop.f32.mrb[2].mxu1 }
 0x441   :  { %v2489_v49 = vpop.f32.mrb[3].mxu1  ;;  %2493 = vmatmul.mubr.msk.f32.vlgmr.msra.gmra.mrb[6].mxu0 %vm132_vm2, %v457_v47 }
 0x442   :  { %2501 = vmatpush3.xpose.msk.msra.mxu0 %vm132_vm2, %v610_v48  ;;  %2502 = vmatprep.mubr.msk.f32.mxu0 %vm2733_vm1, %v2732_v8 }
 0x443   :  { %2510 = vmatprep.subr.mxu0 %v2732_v8 }
 0x445   :  { %2503 = vmatmul.mubr.msk.f32.vlgmr.msra.gmra.mrb[8].mxu0 %vm132_vm2, %v608_v50 }
 0x446   :  { %2512 = vmatprep.mubr.msk.f32.mxu0 %vm2733_vm1, %v2732_v8  ;;  %2511 = vmatpush3.msra.mxu0 %v2918_v10 }
 0x447   :  { %2520 = vmatprep.subr.mxu0 %v2732_v8 }
 0x510   :  { %v603_v51 = vpop.f32.mrb[4].mxu1 }
 0x511   :  { %v2499_v52 = vpop.f32.mrb[5].mxu1 }
 0x514   :  { %v530_v53 = vpop.f32.mrb[6].mxu0 }
 0x515   :  { %v2894_v54 = vadd.f32 %v603_v51, %v530_v53  ;;  %v2494_v55 = vpop.f32.mrb[7].mxu0 }
 0x518   :  { %v681_v56 = vpop.f32.mrb[8].mxu0 }
 0x519   :  { %v685_v57 = vmul.f32 0.35355338, %v681_v56  ;;  %v2504_v58 = vpop.f32.mrb[9].mxu0 }
 0x51b   :  { %v686_v59 = vsel %vm132_vm2, %v685_v57, -inf }
 0x51c   :  { %687 = vmax.xlane.f32.xlu1 %v686_v59 }
 0x52d   :  { %849 = vrot.lane.b32.xlu1 %v2830_v13, %s2741_s27 }
 0x531   :  { %847 = vrot.lane.b32.xlu1 %v2830_v13, %s2742_s28 }
 0x535   :  { %1088 = vrot.lane.b32.xlu1 %v2828_v11, %s2735_s18 }
 0x5a9   :  { %v688_v60 = vpop.xlane.xlu1 %687 }
 0x5aa   :  { %v689_v61 = vsub.f32 %v685_v57, %v688_v60 }
 0x5ac   :  { %v690_v62 = vmul.f32 1.442695, %v689_v61 }
 0x5ad   :  { %v850_v4 = vpop.permute.xlu1 %849 }
 0x5ae   :  { %2676 = vpow2.f32 %v690_v62 }
 0x5b1   :  { %v848_v9 = vpop.permute.xlu1 %847 }
 0x5b5   :  { %v1089_v27 = vpop.permute.xlu1 %1088 }
 0x5b8   :  { %v2677_v63 = vpop.eup %2676 }
 0x5b9   :  { %v692_v0 = vsel %vm132_vm2, %v2677_v63, 0.0 }
 0x5ba   :  { %693 = vadd.xlane.f32.xlu0 %v692_v0 }
 0x5d0   :  { %697 = vrot.lane.b32.xlu0 %v2830_v13, %s2743_s29 }
 0x647   :  { %v694_v1 = vpop.xlane.xlu0 %693 }
 0x648   :  { %2678 = vrcp.f32 %v694_v1 }
 0x64b   :  { %v698_v2 = vpop.permute.xlu0 %697 }
 0x64c   :  { %2506 = vmatpush3.msra.mxu1 %v698_v2 }
 0x64d   :  { %2515 = vmatprep.subr.mxu1 %v2732_v8 }
 0x652   :  { %v2679_v3 = vpop.eup %2678 }
 0x653   :  { %v696_v6 = vmul.f32 %v2679_v3, %v2677_v63 }
 0x655   :  { %2508 = vmatmul.mubr.msk.f32.vlgmr.msra.gmra.mrb[6].mxu1 %vm132_vm2, %v696_v6 }
 0x656   :  { %2516 = vmatpush3.xpose.msk.msra.mxu1 %vm132_vm2, %v850_v4  ;;  %2517 = vmatprep.mubr.msk.f32.mxu1 %vm2733_vm1, %v2732_v8 }
 0x657   :  { %2525 = vmatprep.subr.mxu1 %v2732_v8 }
 0x659   :  { %2518 = vmatmul.mubr.msk.f32.vlgmr.msra.gmra.mrb[8].mxu1 %vm132_vm2, %v848_v9 }
 0x65a   :  { %2527 = vmatprep.mubr.msk.f32.mxu1 %vm2733_vm1, %v2732_v8  ;;  %2526 = vmatpush3.msra.mxu1 %v2954_v33 }
 0x65b   :  { %2535 = vmatprep.subr.mxu1 %v2732_v8 }
 0x728   :  { %v769_v12 = vpop.f32.mrb[6].mxu1 }
 0x729   :  { %v2509_v14 = vpop.f32.mrb[7].mxu1  ;;  %2513 = vmatmul.mubr.msk.f32.vlgmr.msra.gmra.mrb[10].mxu0 %vm132_vm2, %v769_v12 }
 0x72a   :  { %2522 = vmatprep.mubr.msk.f32.mxu0 %vm2733_vm1, %v2732_v8 }
 0x72c   :  { %v921_v15 = vpop.f32.mrb[8].mxu1 }
 0x72d   :  { %v925_v16 = vmul.f32 0.35355338, %v921_v15  ;;  %v2519_v17 = vpop.f32.mrb[9].mxu1 }
 0x72f   :  { %v926_v18 = vsel %vm132_vm2, %v925_v16, -inf }
 0x730   :  { %927 = vmax.xlane.f32.xlu0 %v926_v18 }
 0x746   :  { %937 = vrot.lane.b32.xlu0 %v2830_v13, %s2744_s10 }
 0x74a   :  { %1254 = vrot.lane.b32.xlu0 %v2828_v11, %s2736_s19  ;;  %s2745_s19 = smov [#allocation2]  }
 0x7bd   :  { %v928_v19 = vpop.xlane.xlu0 %927 }
 0x7be   :  { %v929_v20 = vsub.f32 %v925_v16, %v928_v19 }
 0x7c0   :  { %v930_v21 = vmul.f32 1.442695, %v929_v20 }
 0x7c1   :  { %v938_v22 = vpop.permute.xlu0 %937 }
 0x7c2   :  { %2680 = vpow2.f32 %v930_v21  ;;  %2521 = vmatpush3.msra.mxu0 %v938_v22 }
 0x7c3   :  { %2530 = vmatprep.subr.mxu0 %v2732_v8 }
 0x7c5   :  { %v1255_v31 = vpop.permute.xlu0 %1254 }
 0x7cc   :  { %v2681_v23 = vpop.eup %2680 }
 0x7cd   :  { %v932_v24 = vsel %vm132_vm2, %v2681_v23, 0.0 }
 0x7ce   :  { %933 = vadd.xlane.f32.xlu1 %v932_v24 }
 0x7df   :  { %1252 = vrot.lane.b32.xlu1 %v2828_v11, %s2734_s0 }
 0x7fc   :  { %v842_v25 = vpop.f32.mrb[10].mxu0 }
 0x7fd   :  { %v846_v13 = vadd.f32 %v842_v25, %v2894_v54  ;;  %v2514_v26 = vpop.f32.mrb[11].mxu0 }
 0x85b   :  { %v934_v28 = vpop.xlane.xlu1 %933 }
 0x85c   :  { %2682 = vrcp.f32 %v934_v28 }
 0x85f   :  { %v1253_v32 = vpop.permute.xlu1 %1252 }
 0x866   :  { %v2683_v29 = vpop.eup %2682 }
 0x867   :  { %v936_v30 = vmul.f32 %v2683_v29, %v2681_v23 }
 0x869   :  { %2523 = vmatmul.mubr.msk.f32.vlgmr.msra.gmra.mrb[12].mxu0 %vm132_vm2, %v936_v30 }
 0x86a   :  { %2531 = vmatpush3.xpose.msk.msra.mxu0 %vm132_vm2, %v1089_v27  ;;  %2532 = vmatprep.mubr.msk.f32.mxu0 %vm2733_vm1, %v2732_v8 }
 0x86b   :  { %2540 = vmatprep.subr.mxu0 %v2732_v8 }
 0x86d   :  { %2533 = vmatmul.mubr.msk.f32.vlgmr.msra.gmra.mrb[14].mxu0 %vm132_vm2, %v2828_v11 }
 0x86e   :  { %2541 = vmatpush3.xpose.msk.msra.mxu0 %vm132_vm2, %v1255_v31  ;;  %2542 = vmatprep.mubr.msk.f32.mxu0 %vm2733_vm1, %v2732_v8  ;;  %v2378_v31 = vld [vmem:[%s3116_s7] ss:$0 sm:$0xff] }
 0x86f   :  { %2550 = vmatprep.subr.mxu0 %v2732_v8 }
 0x871   :  { %2543 = vmatmul.mubr.msk.f32.vlgmr.msra.gmra.mrb[16].mxu0 %vm132_vm2, %v1253_v32 }
 0x872   :  { %2551 = vmatpush3.msra.mxu0 %v2864_v35  ;;  %2552 = vmatprep.mubr.msk.f32.mxu0 %vm2733_vm1, %v2732_v8 }
 0x873   :  { %2560 = vmatprep.subr.mxu0 %v2732_v8 }
 0x93c   :  { %v1009_v34 = vpop.f32.mrb[12].mxu0 }
 0x93d   :  { %v2524_v36 = vpop.f32.mrb[13].mxu0  ;;  %2528 = vmatmul.mubr.msk.f32.vlgmr.msra.gmra.mrb[10].mxu1 %vm132_vm2, %v1009_v34 }
 0x93e   :  { %2537 = vmatprep.mubr.msk.f32.mxu1 %vm2733_vm1, %v2732_v8 }
 0x940   :  { %v1160_v35 = vpop.f32.mrb[14].mxu0 }
 0x941   :  { %v1164_v37 = vmul.f32 0.35355338, %v1160_v35  ;;  %v2534_v38 = vpop.f32.mrb[15].mxu0 }
 0x943   :  { %v1165_v39 = vsel %vm132_vm2, %v1164_v37, -inf }
 0x944   :  { %1166 = vmax.xlane.f32.xlu0 %v1165_v39  ;;  %v1326_v40 = vpop.f32.mrb[16].mxu0 }
 0x945   :  { %v1330_v41 = vmul.f32 0.35355338, %v1326_v40  ;;  %v2544_v42 = vpop.f32.mrb[17].mxu0 }
 0x947   :  { %v1331_v43 = vsel %vm132_vm2, %v1330_v41, -inf }
 0x948   :  { %1332 = vmax.xlane.f32.xlu1 %v1331_v43 }
 0x959   :  { %1176 = vrot.lane.b32.xlu1 %v2828_v11, %s2738_s20 }
 0x95d   :  { %1566 = vrot.lane.b32.xlu1 %v2828_v11, %s2739_s21 }
 0x961   :  { %1564 = vrot.lane.b32.xlu1 %v2828_v11, %s2740_s22 }
 0x9d1   :  { %v1167_v45 = vpop.xlane.xlu0 %1166 }
 0x9d2   :  { %v1168_v46 = vsub.f32 %v1164_v37, %v1167_v45 }
 0x9d4   :  { %v1169_v47 = vmul.f32 1.442695, %v1168_v46 }
 0x9d5   :  { %v1333_v48 = vpop.xlane.xlu1 %1332 }
 0x9d6   :  { %2684 = vpow2.f32 %v1169_v47  ;;  %v1334_v49 = vsub.f32 %v1330_v41, %v1333_v48 }
 0x9d8   :  { %v1335_v50 = vmul.f32 1.442695, %v1334_v49 }
 0x9d9   :  { %v1177_v51 = vpop.permute.xlu1 %1176 }
 0x9da   :  { %2686 = vpow2.f32 %v1335_v50  ;;  %2536 = vmatpush3.msra.mxu1 %v1177_v51 }
 0x9db   :  { %2545 = vmatprep.subr.mxu1 %v2732_v8 }
 0x9dd   :  { %v1567_v4 = vpop.permute.xlu1 %1566 }
 0x9e0   :  { %v2685_v52 = vpop.eup %2684 }
 0x9e1   :  { %v1171_v53 = vsel %vm132_vm2, %v2685_v52, 0.0 }
 0x9e2   :  { %1172 = vadd.xlane.f32.xlu0 %v1171_v53 }
 0x9e4   :  { %v2687_v54 = vpop.eup %2686 }
 0x9e5   :  { %v1337_v55 = vsel %vm132_vm2, %v2687_v54, 0.0 }
 0x9e6   :  { %1338 = vadd.xlane.f32.xlu0 %v1337_v55 }
 0x9fc   :  { %1342 = vrot.lane.b32.xlu0 %v2828_v11, %s2737_s2  ;;  %s2332_s2 = sshll.u32 %s2745_s19, 4  ;;  %s2333_s2 = int_to_ptr.vmem [resolvable:$true] %s2332_s2 }
 0x9fd   :  { %s2708_s20 = scalar_lea.vmem %s2333_s2, 256  ;;  %p2713_p1 = scmp.lt.s32.totalorder %s2333_s2, %s2333_s2 }
 0x9fe   :  { %p2709_p0 = scmp.ne.s32.totalorder %s2333_s2, %s2708_s20  ;;  %p2714_p2 = scmp.lt.s32.totalorder %s2708_s20, %s2708_s20 }
 0xa00   :  { %p2715_p3 = por %p2714_p2, %p2713_p1 }
 0xa02   :  { %p2716_p4 = pnand %p2715_p3, %p2709_p0 }
 0xa10   :  { %v1082_v56 = vpop.f32.mrb[10].mxu1 }
 0xa11   :  { %v2974_v57 = vadd.f32 %v1082_v56, %v846_v13  ;;  %v2529_v58 = vpop.f32.mrb[11].mxu1 }
 0xa13   :  { %v2049_v36 = vadd.f32 %v2378_v31, %v2974_v57 }
 0xa15   :  { %v2051_v39 = vadd.f32 %v2049_v36, %v2808_v5 }
 0xa17   :  { %v2055_v40 = vsel %vm43_vm0, %v2051_v39, 0.0 }
 0xa6f   :  { %v1173_v59 = vpop.xlane.xlu0 %1172 }
 0xa70   :  { %2688 = vrcp.f32 %v1173_v59 }
 0xa73   :  { %v1339_v60 = vpop.xlane.xlu0 %1338 }
 0xa74   :  { %2690 = vrcp.f32 %v1339_v60 }
 0xa77   :  { %v1343_v63 = vpop.permute.xlu0 %1342 }
 0xa7a   :  { %v2689_v61 = vpop.eup %2688 }
 0xa7b   :  { %v1175_v62 = vmul.f32 %v2689_v61, %v2685_v52 }
 0xa7d   :  { %2538 = vmatmul.mubr.msk.f32.vlgmr.msra.gmra.mrb[12].mxu1 %vm132_vm2, %v1175_v62 }
 0xa7e   :  { %v2691_v0 = vpop.eup %2690  ;;  %2546 = vmatpush3.msra.mxu1 %v1343_v63  ;;  %2547 = vmatprep.mubr.msk.f32.mxu1 %vm2733_vm1, %v2732_v8 }
 0xa7f   :  { %v1341_v1 = vmul.f32 %v2691_v0, %v2687_v54  ;;  %2555 = vmatprep.subr.mxu1 %v2732_v8 }
 0xa81   :  { %2548 = vmatmul.mubr.msk.f32.vlgmr.msra.gmra.mrb[14].mxu1 %vm132_vm2, %v1341_v1 }
 0xa82   :  { %2556 = vmatpush3.msra.mxu1 %v2879_v44  ;;  %2557 = vmatprep.mubr.msk.f32.mxu1 %vm2733_vm1, %v2732_v8  ;;  %v1565_v44 = vpop.permute.xlu1 %1564 }
 0xa83   :  { %2565 = vmatprep.subr.mxu1 %v2732_v8 }
 0xb50   :  { %v1248_v2 = vpop.f32.mrb[12].mxu1 }
 0xb51   :  { %v2539_v3 = vpop.f32.mrb[13].mxu1  ;;  %2558 = vmatmul.mubr.msk.f32.vlgmr.msra.gmra.mrb[16].mxu1 %vm132_vm2, %v1248_v2 }
 0xb52   :  { %2567 = vmatprep.mubr.msk.f32.mxu1 %vm2733_vm1, %v2732_v8 }
 0xb54   :  { %v1414_v6 = vpop.f32.mrb[14].mxu1 }
 0xb55   :  { %v2549_v9 = vpop.f32.mrb[15].mxu1  ;;  %2553 = vmatmul.mubr.msk.f32.vlgmr.msra.gmra.mrb[18].mxu0 %vm132_vm2, %v1414_v6 }
 0xb56   :  { %2561 = vmatpush3.xpose.msk.msra.mxu0 %vm132_vm2, %v1567_v4  ;;  %2562 = vmatprep.mubr.msk.f32.mxu0 %vm2733_vm1, %v2732_v8 }
 0xb57   :  { %2570 = vmatprep.subr.mxu0 %v2732_v8 }
 0xb59   :  { %2563 = vmatmul.mubr.msk.f32.vlgmr.msra.gmra.mrb[20].mxu0 %vm132_vm2, %v1565_v44 }
 0xb5a   :  { %2571 = vmatpush3.msra.mxu0 %v2918_v10  ;;  %2572 = vmatprep.mubr.msk.f32.mxu0 %vm2733_vm1, %v2732_v8 }
 0xb5b   :  { %2580 = vmatprep.subr.mxu0 %v2732_v8 }
 0xc24   :  { %v1560_v12 = vpop.f32.mrb[16].mxu1 }
 0xc25   :  { %v2559_v14 = vpop.f32.mrb[17].mxu1 }
 0xc28   :  { %v1487_v15 = vpop.f32.mrb[18].mxu0 }
 0xc29   :  { %v1561_v16 = vadd.f32 %v1560_v12, %v1487_v15  ;;  %v2554_v17 = vpop.f32.mrb[19].mxu0  ;;  %v2380_v15 = vld [vmem:[%s3116_s7 + $0x2] ss:$0 sm:$0xff] }
 0xc2c   :  { %v1638_v18 = vpop.f32.mrb[20].mxu0 }
 0xc2d   :  { %v1642_v19 = vmul.f32 0.35355338, %v1638_v18  ;;  %v2564_v20 = vpop.f32.mrb[21].mxu0  ;;  %v2094_v18 = vld [vmem:[%s3113_s4] sm:$0xff] }
 0xc2f   :  { %v1643_v21 = vsel %vm132_vm2, %v1642_v19, -inf }
 0xc30   :  { %1644 = vmax.xlane.f32.xlu0 %v1643_v21  ;;  %v2096_v21 = vld [vmem:[%s3113_s4 + $0x10] sm:$0xff] }
 0xc46   :  { %1654 = vrot.lane.b32.xlu0 %v2828_v11, %s2743_s29 }
 0xc4a   :  { %1804 = vrot.lane.b32.xlu0 %v2828_v11, %s2742_s28 }
 0xcbd   :  { %v1645_v10 = vpop.xlane.xlu0 %1644 }
 0xcbe   :  { %v1646_v22 = vsub.f32 %v1642_v19, %v1645_v10  ;;  %v2095_v19 = vld [vmem:[%s3113_s4 + $0x8] sm:$0xff]  ;;  %v2097_v10 = vld [vmem:[%s3113_s4 + $0x18] sm:$0xff] }
 0xcbf   :  { %v2628_v20 = vpack.c.bf16 %v2095_v19, %v2094_v18 }
 0xcc0   :  { %v1647_v23 = vmul.f32 1.442695, %v1646_v22  ;;  %v2632_v22 = vpack.c.bf16 %v2097_v10, %v2096_v21 }
 0xcc1   :  { %v1655_v24 = vpop.permute.xlu0 %1654 }
 0xcc2   :  { %2692 = vpow2.f32 %v1647_v23  ;;  %2566 = vmatpush3.msra.mxu1 %v1655_v24  ;;  %v2188_v23 = vld [vmem:[%s3115_s6] sm:$0xff]  ;;  %v2189_v24 = vld [vmem:[%s3115_s6 + $0x8] sm:$0xff] }
 0xcc3   :  { %2575 = vmatprep.subr.mxu1 %v2732_v8 }
 0xcc5   :  { %v1805_v30 = vpop.permute.xlu0 %1804 }
 0xccc   :  { %v2693_v25 = vpop.eup %2692 }
 0xccd   :  { %v1649_v13 = vsel %vm132_vm2, %v2693_v25, 0.0 }
 0xcce   :  { %1650 = vadd.xlane.f32.xlu1 %v1649_v13  ;;  %v2636_v13 = vpack.c.bf16 %v2189_v24, %v2188_v23 }
 0xcdf   :  { %1806 = vrot.lane.b32.xlu1 %v2828_v11, %s2741_s27 }
 0xd5b   :  { %v1651_v26 = vpop.xlane.xlu1 %1650 }
 0xd5c   :  { %2694 = vrcp.f32 %v1651_v26  ;;  %v2191_v26 = vld [vmem:[%s3115_s6 + $0x18] sm:$0xff] }
 0xd5f   :  { %v1807_v29 = vpop.permute.xlu1 %1806 }
 0xd66   :  { %v2695_v27 = vpop.eup %2694 }
 0xd67   :  { %v1653_v28 = vmul.f32 %v2695_v27, %v2693_v25  ;;  %v2190_v25 = vld [vmem:[%s3115_s6 + $0x10] sm:$0xff] }
 0xd68   :  { %v2640_v27 = vpack.c.bf16 %v2191_v26, %v2190_v25 }
 0xd69   :  { %2568 = vmatmul.mubr.msk.f32.vlgmr.msra.gmra.mrb[18].mxu1 %vm132_vm2, %v1653_v28  ;;  %v2192_v28 = vld [vmem:[%s3115_s6 + $0x20] sm:$0xff] }
 0xd6a   :  { %2576 = vmatpush3.xpose.msk.msra.mxu1 %vm132_vm2, %v1807_v29  ;;  %2577 = vmatprep.mubr.msk.f32.mxu1 %vm2733_vm1, %v2732_v8  ;;  %v2193_v29 = vld [vmem:[%s3115_s6 + $0x28] sm:$0xff] }
 0xd6b   :  { %2585 = vmatprep.subr.mxu1 %v2732_v8 }
 0xd6d   :  { %2578 = vmatmul.mubr.msk.f32.vlgmr.msra.gmra.mrb[20].mxu1 %vm132_vm2, %v1805_v30  ;;  %v2644_v30 = vpack.c.bf16 %v2193_v29, %v2192_v28 }
 0xd6e   :  { %2586 = vmatpush3.msra.mxu1 %v2954_v33  ;;  %2587 = vmatprep.mubr.msk.f32.mxu1 %vm2733_vm1, %v2732_v8 }
 0xd6f   :  { %2637 = vmatprep.subr.bf16.mxu1 %v2636_v13 }
 0xe3c   :  { %v1726_v32 = vpop.f32.mrb[18].mxu1 }
 0xe3d   :  { %v2569_v34 = vpop.f32.mrb[19].mxu1  ;;  %2573 = vmatmul.mubr.msk.f32.vlgmr.msra.gmra.mrb[22].mxu0 %vm132_vm2, %v1726_v32 }
 0xe3e   :  { %2582 = vmatprep.mubr.msk.f32.mxu0 %vm2733_vm1, %v2732_v8 }
 0xe40   :  { %v1878_v35 = vpop.f32.mrb[20].mxu1 }
 0xe41   :  { %v1882_v37 = vmul.f32 0.35355338, %v1878_v35  ;;  %v2579_v38 = vpop.f32.mrb[21].mxu1 }
 0xe43   :  { %v1883_v33 = vsel %vm132_vm2, %v1882_v37, -inf }
 0xe44   :  { %1884 = vmax.xlane.f32.xlu1 %v1883_v33  ;;  %v2194_v33 = vld [vmem:[%s3115_s6 + $0x30] sm:$0xff] }
 0xe48   :  { %2056 = vadd.xlane.f32.xlu1 %v2055_v40 }
 0xed1   :  { %v1885_v41 = vpop.xlane.xlu1 %1884 }
 0xed2   :  { %v1886_v42 = vsub.f32 %v1882_v37, %v1885_v41  ;;  %v2381_v41 = vld [vmem:[%s3114_s5] ss:$0 sm:$0xff] }
 0xed4   :  { %v1887_v43 = vmul.f32 1.442695, %v1886_v42 }
 0xed5   :  { %v2057_v54 = vpop.xlane.xlu1 %2056 }
 0xed6   :  { %2696 = vpow2.f32 %v1887_v43  ;;  %v2062_v55 = vmul.f32 0.03125, %v2057_v54 }
 0xed8   :  { %v2064_v58 = vsub.f32 %v2051_v39, %v2062_v55  ;;  %v2195_v39 = vld [vmem:[%s3115_s6 + $0x38] sm:$0xff] }
 0xed9   :  { %v2648_v40 = vpack.c.bf16 %v2195_v39, %v2194_v33 }
 0xeda   :  { %v2066_v62 = vmul.f32 %v2064_v58, %v2064_v58 }
 0xedc   :  { %v2068_v63 = vsel %vm43_vm0, %v2066_v62, 0.0 }
 0xee0   :  { %v2697_v45 = vpop.eup %2696 }
 0xee1   :  { %v1889_v8 = vsel %vm132_vm2, %v2697_v45, 0.0 }
 0xee2   :  { %1890 = vadd.xlane.f32.xlu0 %v1889_v8 }
 0xef8   :  { %1894 = vrot.lane.b32.xlu0 %v2828_v11, %s2744_s10 }
 0xf10   :  { %v1799_v46 = vpop.f32.mrb[22].mxu0 }
 0xf11   :  { %v1803_v47 = vadd.f32 %v1799_v46, %v1561_v16  ;;  %v2574_v48 = vpop.f32.mrb[23].mxu0 }
 0xf12   :  { %v2384_v48 = vld [vmem:[%s3116_s7 + $0x3] ss:$0 sm:$0xff] }
 0xf6f   :  { %v1891_v49 = vpop.xlane.xlu0 %1890 }
 0xf70   :  { %2698 = vrcp.f32 %v1891_v49 }
 0xf73   :  { %v1895_v5 = vpop.permute.xlu0 %1894 }
 0xf74   :  { %2581 = vmatpush3.msra.mxu0 %v1895_v5 }
 0xf75   :  { %2629 = vmatprep.subr.bf16.mxu0 %v2628_v20 }
 0xf7a   :  { %v2699_v50 = vpop.eup %2698 }
 0xf7b   :  { %v1893_v51 = vmul.f32 %v2699_v50, %v2697_v45 }
 0xf7d   :  { %2583 = vmatmul.mubr.msk.f32.vlgmr.msra.gmra.mrb[24].mxu0 %vm132_vm2, %v1893_v51 }
 0xf7e   :  { %2631 = vmatpush3.bf16.msra.mxu0 %v2628_v20 }
 0xf7f   :  { %2633 = vmatprep.subr.bf16.mxu0 %v2632_v22 }
 0xf82   :  { %2635 = vmatpush3.bf16.msra.mxu0 %v2632_v22 }
0x1050   :  { %v1966_v52 = vpop.f32.mrb[24].mxu0 }
0x1051   :  { %v2584_v53 = vpop.f32.mrb[25].mxu0  ;;  %2588 = vmatmul.mubr.msk.f32.vlgmr.msra.gmra.mrb[22].mxu1 %vm132_vm2, %v1966_v52 }
0x1052   :  { %2639 = vmatpush3.bf16.msra.mxu1 %v2636_v13 }
0x1053   :  { %2641 = vmatprep.subr.bf16.mxu1 %v2640_v27 }
0x1056   :  { %2643 = vmatpush3.bf16.msra.mxu1 %v2640_v27 }
0x1057   :  { %2645 = vmatprep.subr.bf16.mxu1 %v2644_v30 }
0x105a   :  { %2647 = vmatpush3.bf16.msra.mxu1 %v2644_v30 }
0x105b   :  { %2649 = vmatprep.subr.bf16.mxu1 %v2648_v40 }
0x105e   :  { %2651 = vmatpush3.bf16.msra.mxu1 %v2648_v40 }
0x1124   :  { %v2039_v56 = vpop.f32.mrb[22].mxu1 }
0x1125   :  { %v2043_v57 = vadd.f32 %v2039_v56, %v1803_v47  ;;  %v2589_v11 = vpop.f32.mrb[23].mxu1 }
0x1127   :  { %v2050_v59 = vadd.f32 %v2378_v31, %v2043_v57 }
0x1129   :  { %v2052_v60 = vadd.f32 %v2050_v59, %v2815_v7  ;;  %v2379_v7 = vld [vmem:[%s3116_s7 + $0x1] ss:$0 sm:$0xff] }
0x112b   :  { %v2058_v61 = vsel %vm43_vm0, %v2052_v60, 0.0 }
0x112c   :  { %2059 = vadd.xlane.f32.xlu1 %v2058_v61 }
0x1130   :  { %2069 = vadd.xlane.f32.xlu1 %v2068_v63 }
0x11b9   :  { %v2060_v0 = vpop.xlane.xlu1 %2059 }
0x11ba   :  { %v2063_v1 = vmul.f32 0.03125, %v2060_v0 }
0x11bc   :  { %v2065_v2 = vsub.f32 %v2052_v60, %v2063_v1 }
0x11bd   :  { %v2070_v3 = vpop.xlane.xlu1 %2069 }
0x11be   :  { %v2074_v4 = vmul.f32 0.03125, %v2070_v3  ;;  %v2067_v6 = vmul.f32 %v2065_v2, %v2065_v2 }
0x11c0   :  { %v2076_v9 = vadd.f32 1e-05, %v2074_v4  ;;  %v2071_v44 = vsel %vm43_vm0, %v2067_v6, 0.0 }
0x11c1   :  { %2072 = vadd.xlane.f32.xlu1 %v2071_v44 }
0x11c2   :  { %2700 = vrsqrt.f32 %v2076_v9 }
0x11cc   :  { %v2701_v12 = vpop.eup %2700 }
0x11cd   :  { %v2080_v14 = vmul.f32 %v2701_v12, %v2064_v58  ;;  %v2387_v12 = vld [vmem:[%s3116_s7 + $0x4] ss:$0 sm:$0xff] }
0x11cf   :  { %v2086_v16 = vmul.f32 %v2379_v7, %v2080_v14  ;;  %v2388_v14 = vld [vmem:[%s3116_s7 + $0x5] ss:$0 sm:$0xff] }
0x11d1   :  { %v2092_v17 = vadd.f32 %v2380_v15, %v2086_v16 }
0x11d3   :  { %2598 = vmatprep.mubr.msk.f32.mxu0 %vm43_vm0, %v2092_v17 }
0x124e   :  { %v2073_v31 = vpop.xlane.xlu1 %2072 }
0x124f   :  { %v2075_v32 = vmul.f32 0.03125, %v2073_v31 }
0x1251   :  { %v2077_v34 = vadd.f32 1e-05, %v2075_v32 }
0x1253   :  { %2702 = vrsqrt.f32 %v2077_v34 }
0x125d   :  { %v2703_v36 = vpop.eup %2702 }
0x125e   :  { %v2081_v35 = vmul.f32 %v2703_v36, %v2065_v2 }
0x1260   :  { %v2087_v37 = vmul.f32 %v2379_v7, %v2081_v35 }
0x1262   :  { %v2093_v38 = vadd.f32 %v2380_v15, %v2087_v37 }
0x1264   :  { %2599 = vmatmul.mubr.msk.f32.vlgmr.msra.gmra.mrb[26].mxu0 %vm43_vm0, %v2093_v38 }
0x1337   :  { %v2600_v42 = vpop.f32.mrb[26].mxu0 }
0x1338   :  { %v2183_v43 = vadd.f32 %v2600_v42, %v2381_v41  ;;  %v2177_v45 = vpop.f32.mrb[27].mxu0 }
0x1339   :  { %v2178_v8 = vadd.f32 %v2381_v41, %v2177_v45 }
0x133a   :  { %v2187_v47 = vmax.f32 %v2183_v43, 0.0 }
0x133b   :  { %v2186_v46 = vmax.f32 %v2178_v8, 0.0 }
0x133d   :  { %2617 = vmatprep.mubr.msk.f32.mxu1 %vm2201_vm3, %v2186_v46 }
0x133e   :  { %2618 = vmatmul.mubr.msk.f32.vlgmr.msra.gmra.mrb[24].mxu1 %vm2201_vm3, %v2187_v47 }
0x1411   :  { %v2619_v49 = vpop.f32.mrb[24].mxu1 }
0x1412   :  { %v2274_v5 = vpop.f32.mrb[25].mxu1  ;;  %v2280_v50 = vadd.f32 %v2619_v49, %v2384_v48 }
0x1413   :  { %v2275_v51 = vadd.f32 %v2384_v48, %v2274_v5 }
0x1414   :  { %v2284_v54 = vadd.f32 %v2280_v50, %v2093_v38 }
0x1415   :  { %v2283_v52 = vadd.f32 %v2275_v51, %v2092_v17 }
0x1416   :  { %v2290_v55 = vsel %vm43_vm0, %v2284_v54, 0.0 }
0x1417   :  { %v2287_v53 = vsel %vm43_vm0, %v2283_v52, 0.0 }
0x1418   :  { %2288 = vadd.xlane.f32.xlu1 %v2287_v53 }
0x141c   :  { %2291 = vadd.xlane.f32.xlu1 %v2290_v55 }
0x14a5   :  { %v2289_v56 = vpop.xlane.xlu1 %2288 }
0x14a6   :  { %v2293_v57 = vmul.f32 0.03125, %v2289_v56 }
0x14a8   :  { %v2295_v11 = vsub.f32 %v2283_v52, %v2293_v57 }
0x14a9   :  { %v2292_v58 = vpop.xlane.xlu1 %2291 }
0x14aa   :  { %v2294_v59 = vmul.f32 0.03125, %v2292_v58  ;;  %v2297_v60 = vmul.f32 %v2295_v11, %v2295_v11 }
0x14ac   :  { %v2296_v61 = vsub.f32 %v2284_v54, %v2294_v59  ;;  %v2299_v62 = vsel %vm43_vm0, %v2297_v60, 0.0 }
0x14ad   :  { %2300 = vadd.xlane.f32.xlu0 %v2299_v62 }
0x14ae   :  { %v2298_v63 = vmul.f32 %v2296_v61, %v2296_v61 }
0x14b0   :  { %v2302_v0 = vsel %vm43_vm0, %v2298_v63, 0.0 }
0x14b1   :  { %2303 = vadd.xlane.f32.xlu1 %v2302_v0 }
0x153a   :  { %v2301_v1 = vpop.xlane.xlu0 %2300 }
0x153b   :  { %v2305_v2 = vmul.f32 0.03125, %v2301_v1 }
0x153d   :  { %v2307_v3 = vadd.f32 1e-05, %v2305_v2 }
0x153e   :  { %v2304_v4 = vpop.xlane.xlu1 %2303 }
0x153f   :  { %2704 = vrsqrt.f32 %v2307_v3  ;;  %v2306_v6 = vmul.f32 0.03125, %v2304_v4 }
0x1541   :  { %v2308_v9 = vadd.f32 1e-05, %v2306_v6 }
0x1543   :  { %2706 = vrsqrt.f32 %v2308_v9 }
0x1549   :  { %v2705_v44 = vpop.eup %2704 }
0x154a   :  { %v2311_v7 = vmul.f32 %v2705_v44, %v2295_v11 }
0x154c   :  { %v2317_v15 = vmul.f32 %v2387_v12, %v2311_v7 }
0x154d   :  { %v2707_v16 = vpop.eup %2706 }
0x154e   :  { %v2312_v17 = vmul.f32 %v2707_v16, %v2296_v61  ;;  %v2323_v18 = vadd.f32 %v2388_v14, %v2317_v15 }
0x1550   :  { %v2318_v19 = vmul.f32 %v2387_v12, %v2312_v17  ;;  %2325 = vst.msk [vmem:[#allocation2] sm:$0xff] %vm43_vm0, %v2323_v18 }
0x1552   :  { %v2324_v20 = vadd.f32 %v2388_v14, %v2318_v19 }
0x1554   :  { %2326 = vst.msk [vmem:[#allocation2 + $0x8] sm:$0xff] %vm43_vm0, %v2324_v20 }
0x1555   :  { %2719 = shalt.err (!%p2716_p4)
}
0x1556   :  { %s2720_s22 = scalar_lea.hbm %s3117_s8, 256 }
0x1557   :  { %p2721_p5 = scmp.ne.s32.totalorder %s3117_s8, %s2720_s22  ;;  %p2724_p6 = scmp.lt.u32.totalorder %s2720_s22, %s3117_s8 }
0x1559   :  { %p2726_p7 = pnand %p2724_p6, %p2721_p5 }
0x155b   :  { %2729 = shalt.err (!%p2726_p7)
}
0x155c   :  { %s2746_s27 = smov 128   ;;  %s2747_s28 = smov 8  }
0x155d   :  { %2338 = dma.vmem_to_hbm [thread:$0]  %s2333_s2, 256, %s3117_s8, [#allocation3], %s2746_s27, %s2746_s27, %s2747_s28  }
0x155e   :  { %2730 = dma.done.wait [#allocation3], 256  }
0x155f   :  { %2731 = vsyncadd [#allocation3], 4294967040 }
0x1560   :  { %2342 = vsyncpa [#allocation3], 1 }

</bundles_post_ra>
